<compile_context>
chip_gen: v7x
topology: tpu7x:2x2x1
jax: 0.10.0
libtpu: 0.0.40
codegen_flags: <defaults>
</compile_context>

<pallas_src>
import functools

import jax
import jax.numpy as jnp
from jax.experimental import pallas as pl
from jax.experimental.pallas import tpu as pltpu

_SQRT2_INV = 0.7071067811865476
_LN_EPS = 1e-5


def _gelu(z, approx):
    if approx:
        # tanh approximation -> EUP tanh slot (frees the VALU on v6e/v7x).
        return jax.nn.gelu(z, approximate=True)
    # PyTorch nn.GELU() default: exact (erf-based) GELU.
    return 0.5 * z * (1.0 + jax.lax.erf(z * _SQRT2_INV))


def _layernorm(z, g, b):
    # One-pass stats (mean + mean-of-squares), f32 throughout.
    z = z.astype(jnp.float32)
    mu = jnp.mean(z, axis=-1, keepdims=True)
    ms = jnp.mean(z * z, axis=-1, keepdims=True)
    var = ms - mu * mu
    return (z - mu) * jax.lax.rsqrt(var + _LN_EPS) * g + b


# ----------------------------- kernel 1: class path ---------------------------
def _cls_kernel(x_ref, xc_ref,
                wq_ref, bq_ref, wk_ref, bk_ref, wv_ref, bv_ref, wo_ref, bo_ref,
                sel_ref, selT_ref, g1_ref, be1_ref, w1c_ref, b1c_ref,
                w2c_ref, b2c_ref, g2_ref, be2_ref,
                ln2_ref,
                ws_s, c_s, m_s, l_s, acc_s,
                *, scale, compute_dtype, approx_recip, approx_gelu,
                seq_len, tkv, need_mask):
    kv_i = pl.program_id(1)

    @pl.when(kv_i == 0)
    def _init():
        # Per-batch class query, folded (pre-scaled) into the K projection:
        #   s[t, h] = x_t @ w_s[:, h] + c[h]
        xc = xc_ref[...].astype(compute_dtype)                        # (1, E)
        q = (jnp.dot(xc, wq_ref[...], preferred_element_type=jnp.float32)
             + bq_ref[...]) * scale                                   # (1, E)
        wk_scaled = wk_ref[...] * q                                   # (E, E) f32
        ws_s[...] = jnp.dot(wk_scaled, sel_ref[...],
                            preferred_element_type=jnp.float32
                            ).astype(ws_s.dtype)                      # (E, NHp)
        c_s[...] = jnp.dot(q * bk_ref[...], sel_ref[...],
                           preferred_element_type=jnp.float32)        # (1, NHp)
        m_s[...] = jnp.full_like(m_s, -jnp.inf)
        l_s[...] = jnp.zeros_like(l_s)
        acc_s[...] = jnp.zeros_like(acc_s)

    xt = x_ref[...].astype(compute_dtype)                             # (tS, E)
    if need_mask:
        row = kv_i * tkv + jax.lax.broadcasted_iota(jnp.int32, (tkv, 1), 0)
        valid = row < seq_len
        xt = jnp.where(valid, xt, jnp.zeros_like(xt))

    # V projection and all-head scores for this sequence tile.
    v = (jnp.dot(xt, wv_ref[...], preferred_element_type=jnp.float32)
         + bv_ref[...])                                               # (tS, E)
    s = (jnp.dot(xt, ws_s[...], preferred_element_type=jnp.float32)
         + c_s[...])                                                  # (tS, NHp)
    if need_mask:
        s = jnp.where(valid, s, -jnp.inf)

    # Online softmax over the sequence axis, per head (f32).
    m_prev = m_s[...]
    m_new = jnp.maximum(m_prev, jnp.max(s, axis=0, keepdims=True))    # (1, NHp)
    alpha = jnp.exp(m_prev - m_new)                                   # (1, NHp)
    p = jnp.exp(s - m_new)                                            # (tS, NHp)
    l_s[...] = alpha * l_s[...] + jnp.sum(p, axis=0, keepdims=True)

    # Expand per-head weights across that head's dh lanes (one-hot matmuls).
    selT = selT_ref[...]                                              # (NHp, E)
    p_lane = jnp.dot(p, selT, preferred_element_type=jnp.float32)     # (tS, E)
    a_lane = jnp.dot(alpha, selT, preferred_element_type=jnp.float32)  # (1, E)
    acc_s[...] = a_lane * acc_s[...] + jnp.sum(p_lane * v, axis=0, keepdims=True)
    m_s[...] = m_new

    @pl.when(kv_i == pl.num_programs(1) - 1)
    def _finalize():
        l_lane = jnp.dot(l_s[...], selT_ref[...],
                         preferred_element_type=jnp.float32)          # (1, E)
        attn = acc_s[...] * pl.reciprocal(l_lane, approx=approx_recip)
        attn_out = (jnp.dot(attn.astype(compute_dtype), wo_ref[...],
                            preferred_element_type=jnp.float32) + bo_ref[...])
        xc = xc_ref[...].astype(jnp.float32)
        ln1 = _layernorm(xc + attn_out, g1_ref[...], be1_ref[...])
        h1 = _gelu(jnp.dot(ln1.astype(compute_dtype), w1c_ref[...],
                           preferred_element_type=jnp.float32) + b1c_ref[...],
                   approx_gelu)
        ffc = (jnp.dot(h1.astype(compute_dtype), w2c_ref[...],
                       preferred_element_type=jnp.float32) + b2c_ref[...])
        ln2_ref[...] = _layernorm(ffc + ln1, g2_ref[...], be2_ref[...]
                                  ).astype(ln2_ref.dtype)


# --------------------------- kernel 2: main sequence path ---------------------
def _main_kernel(x_ref, ln2_ref, g3_ref, be3_ref, w1_ref, b1_ref,
                 w2_ref, b2_ref, g4_ref, be4_ref, o_ref,
                 *, compute_dtype, approx_gelu):
    x = x_ref[...].astype(jnp.float32)                                # (tS, E)
    xn = _layernorm(x + ln2_ref[...], g3_ref[...], be3_ref[...])
    h = _gelu(jnp.dot(xn.astype(compute_dtype), w1_ref[...],
                      preferred_element_type=jnp.float32) + b1_ref[...],
              approx_gelu)
    ff = (jnp.dot(h.astype(compute_dtype), w2_ref[...],
                  preferred_element_type=jnp.float32) + b2_ref[...])
    o_ref[...] = _layernorm(xn + ff, g4_ref[...], be4_ref[...]).astype(o_ref.dtype)


# ------------------------------ sizing helpers --------------------------------
def _tpu_vmem_capacity_bytes():
    """Physical VMEM per TensorCore; conservative 64 MiB (v7x) fallback."""
    cap = 64 * 1024 * 1024
    try:
        info = pltpu.get_tpu_info()
        v = getattr(info, "vmem_capacity_bytes", None)
        if v:
            cap = int(v)
    except Exception:
        pass
    return cap


def _align_tile(n, target):
    """Full dim if it fits, otherwise the largest 256-aligned tile <= target."""
    if n <= target:
        return n
    t = max(256, (min(target, n) // 256) * 256)
    return n if t > n else t


def _shrink_to_budget(t, n, per_row_bytes, fixed_bytes, budget):
    if n <= t:
        return t
    while t > 256 and fixed_bytes + t * per_row_bytes > budget:
        t = max(256, t // 2)
    return t


def _pad_ffn(w1, b1, w2, mult=128):
    """Zero-pad the FFN hidden dim to a lane multiple (exact: GELU(0)=0)."""
    h = w1.shape[1]
    hp = ((h + mult - 1) // mult) * mult
    if hp != h:
        w1 = jnp.pad(w1, ((0, 0), (0, hp - h)))
        b1 = jnp.pad(b1, ((0, 0), (0, hp - h)))
        w2 = jnp.pad(w2, ((0, hp - h), (0, 0)))
    return w1, b1, w2, hp


# ----------------------------------- wrapper ----------------------------------
def block_forward(x, x_cls, params, *, num_heads,
                  compute_dtype=jnp.float32, approx_gelu=False,
                  s_tile_main=None, s_tile_kv=None):
    B, S, E = x.shape
    assert x_cls.shape == (B, 1, E)
    assert E % num_heads == 0
    dh = E // num_heads
    scale = 1.0 / float(dh) ** 0.5
    cd = jnp.dtype(compute_dtype)
    cd_size = cd.itemsize
    f32 = jnp.float32
    x_size = x.dtype.itemsize
    approx_recip = (cd != jnp.dtype(jnp.float32))

    # ---- generation-aware VMEM budget / default tiles ------------------------
    vmem_cap = _tpu_vmem_capacity_bytes()
    vmem_limit = (vmem_cap * 3) // 4                 # headroom for compiler scratch
    budget = int(vmem_limit * 0.9)
    big_vmem = vmem_cap >= 100 * 1024 * 1024         # v5e/v6e (128 MiB) vs v7x (64)
    if s_tile_main is None:
        s_tile_main = 1024 if big_vmem else 256
    if s_tile_kv is None:
        s_tile_kv = 512 if big_vmem else 256

    # ---- fuse / pad / cast parameters ----------------------------------------
    wq = params["wq"].astype(cd)
    bq = params["bq"].astype(f32)
    wk = params["wk"].astype(f32)                    # f32: used once/batch in the fold
    bk = params["bk"].astype(f32)
    wv = params["wv"].astype(cd)
    bv = params["bv"].astype(f32)
    wo = params["wo"].astype(cd)
    bo = params["bo"].astype(f32)

    w1c, b1c, w2c, Hcp = _pad_ffn(params["w1c"], params["b1c"], params["w2c"])
    w1, b1f, w2, Hdp = _pad_ffn(params["w1"], params["b1f"], params["w2"])
    w1c = w1c.astype(cd); b1c = b1c.astype(f32)
    w2c = w2c.astype(cd); b2c = params["b2c"].astype(f32)
    w1 = w1.astype(cd); b1f = b1f.astype(f32)
    w2 = w2.astype(cd); b2f = params["b2f"].astype(f32)
    ln = {k: params[k].astype(f32) for k in
          ("g1", "be1", "g2", "be2", "g3", "be3", "g4", "be4")}

    # One-hot head-selector matrices, head axis padded to 128 lanes so the
    # score matmul output and the m/l stats stores are lane-dense.
    NHp = max(128, ((num_heads + 127) // 128) * 128)
    head_id = jnp.arange(E, dtype=jnp.int32) // dh
    sel = (head_id[:, None] == jnp.arange(NHp, dtype=jnp.int32)[None, :]
           ).astype(f32)                             # (E, NHp)
    selT = jnp.transpose(sel)                        # (NHp, E)

    # Whole-array VMEM residency for weights (single copy, no per-step tiling).
    vmem_spec = pl.BlockSpec(memory_space=pltpu.MemorySpace.VMEM)

    # ------------------ pass 1: class-token / attention -> ln2 ---------------
    cls_params = (wq, bq, wk, bk, wv, bv, wo, bo, sel, selT,
                  ln["g1"], ln["be1"], w1c, b1c, w2c, b2c, ln["g2"], ln["be2"])
    cls_fixed = sum(a.size * a.dtype.itemsize for a in cls_params)
    # rough per-row VMEM: x tile (double-buffered) + cast copy + v/p_lane f32
    # intermediates + score/softmax lanes.
    per_row_kv = (2 * x_size + cd_size + 8) * E + 12 * NHp
    tkv = _align_tile(S, s_tile_kv)
    tkv = _shrink_to_budget(tkv, S, per_row_kv, cls_fixed, budget)
    nkv = pl.cdiv(S, tkv)
    need_mask_kv = (S % tkv) != 0

    cls_in_specs = (
        [pl.BlockSpec((None, tkv, E), lambda b, s: (b, s, 0)),
         pl.BlockSpec((None, 1, E), lambda b, s: (b, 0, 0))]
        + [vmem_spec] * len(cls_params))

    cost1 = pl.CostEstimate(
        flops=int(B * (2 * E * E * (2 + NHp)
                       + S * (2 * E * E + 4 * E * NHp)
                       + 4 * E * Hcp)),
        transcendentals=int(B * (S * NHp + Hcp)),
        bytes_accessed=int(B * S * E * x_size + B * E * x_size
                           + cls_fixed + B * E * 4))

    ln2 = pl.pallas_call(
        functools.partial(_cls_kernel, scale=scale, compute_dtype=cd,
                          approx_recip=approx_recip, approx_gelu=approx_gelu,
                          seq_len=S, tkv=tkv, need_mask=need_mask_kv),
        out_shape=jax.ShapeDtypeStruct((B, 1, E), f32),
        grid=(B, nkv),
        in_specs=cls_in_specs,
        out_specs=pl.BlockSpec((None, 1, E), lambda b, s: (b, 0, 0)),
        scratch_shapes=[pltpu.VMEM((E, NHp), cd),      # folded score weights
                        pltpu.VMEM((1, NHp), f32),     # folded score bias
                        pltpu.VMEM((1, NHp), f32),     # running max
                        pltpu.VMEM((1, NHp), f32),     # running sum
                        pltpu.VMEM((1, E), f32)],      # running weighted V
        compiler_params=pltpu.CompilerParams(
            dimension_semantics=("parallel", "arbitrary"),
            vmem_limit_bytes=int(vmem_limit)),
        cost_estimate=cost1,
    )(x, x_cls, *cls_params)

    # ------------------ pass 2: S-tiled residual + norms + FFN ---------------
    main_params = (ln["g3"], ln["be3"], w1, b1f, w2, b2f, ln["g4"], ln["be4"])
    main_fixed = sum(a.size * a.dtype.itemsize for a in main_params)
    per_row_main = (4 * x_size + 8 + cd_size) * E + (4 + cd_size) * Hdp
    tms = _align_tile(S, s_tile_main)
    tms = _shrink_to_budget(tms, S, per_row_main, main_fixed, budget)
    nms = pl.cdiv(S, tms)

    main_in_specs = (
        [pl.BlockSpec((None, tms, E), lambda b, s: (b, s, 0)),
         pl.BlockSpec((None, 1, E), lambda b, s: (b, 0, 0))]
        + [vmem_spec] * len(main_params))

    cost2 = pl.CostEstimate(
        flops=int(4 * B * S * E * Hdp),
        transcendentals=int(B * S * Hdp),
        bytes_accessed=int(2 * B * S * E * x_size + main_fixed + B * E * 4))

    out = pl.pallas_call(
        functools.partial(_main_kernel, compute_dtype=cd, approx_gelu=approx_gelu),
        out_shape=jax.ShapeDtypeStruct((B, S, E), x.dtype),
        grid=(B, nms),
        in_specs=main_in_specs,
        out_specs=pl.BlockSpec((None, tms, E), lambda b, s: (b, s, 0)),
        compiler_params=pltpu.CompilerParams(
            dimension_semantics=("parallel", "parallel"),
            vmem_limit_bytes=int(vmem_limit)),
        cost_estimate=cost2,
    )(x, ln2, *main_params)
    return out


# ----------------------- pure-JAX reference (for checking) --------------------
def _layernorm_ref(z, g, b):
    mu = jnp.mean(z, axis=-1, keepdims=True)
    var = jnp.mean((z - mu) ** 2, axis=-1, keepdims=True)
    return (z - mu) * jax.lax.rsqrt(var + _LN_EPS) * g + b


def ref_single(x, xc, P, num_heads):
    E = x.shape[-1]
    dh = E // num_heads
    scale = 1.0 / (dh ** 0.5)
    gelu = lambda z: 0.5 * z * (1.0 + jax.lax.erf(z * _SQRT2_INV))
    q = xc @ P["wq"] + P["bq"]
    k = x @ P["wk"] + P["bk"]
    v = x @ P["wv"] + P["bv"]
    outs = []
    for h in range(num_heads):
        sl = slice(h * dh, (h + 1) * dh)
        s = (q[:, sl] @ k[:, sl].T) * scale
        p = jax.nn.softmax(s, axis=-1)
        outs.append(p @ v[:, sl])
    attn = jnp.concatenate(outs, axis=-1) @ P["wo"] + P["bo"]
    ln1 = _layernorm_ref(xc + attn, P["g1"], P["be1"])
    ffc = gelu(ln1 @ P["w1c"] + P["b1c"]) @ P["w2c"] + P["b2c"]
    ln2 = _layernorm_ref(ffc + ln1, P["g2"], P["be2"])
    xn = _layernorm_ref(x + ln2, P["g3"], P["be3"])
    ff = gelu(xn @ P["w1"] + P["b1f"]) @ P["w2"] + P["b2f"]
    return _layernorm_ref(xn + ff, P["g4"], P["be4"])


def make_params(key, E, H):
    ks = jax.random.split(key, 14)
    n = lambda k, shape, s: (s * jax.random.normal(k, shape, jnp.float32))
    # Linear weights stored pre-transposed as (in, out) so kernel does x @ W + b.
    P = {
        "wq": n(ks[0], (E, E), 0.1), "bq": n(ks[1], (1, E), 0.02),
        "wk": n(ks[2], (E, E), 0.1), "bk": n(ks[3], (1, E), 0.02),
        "wv": n(ks[4], (E, E), 0.1), "bv": n(ks[5], (1, E), 0.02),
        "wo": n(ks[6], (E, E), 0.1), "bo": n(ks[7], (1, E), 0.02),
        "w1c": n(ks[8], (E, H), 0.1), "b1c": n(ks[9], (1, H), 0.02),
        "w2c": n(ks[10], (H, E), 0.1), "b2c": n(ks[11], (1, E), 0.02),
        "w1": n(ks[12], (E, H), 0.1), "b1f": n(ks[13], (1, H), 0.02),
        "w2": n(ks[10], (H, E), 0.08), "b2f": n(ks[11], (1, E), 0.01),
    }
    for i in (1, 2, 3, 4):
        P[f"g{i}"] = jnp.ones((1, E), jnp.float32) * (1.0 + 0.01 * i)
        P[f"be{i}"] = jnp.ones((1, E), jnp.float32) * (0.005 * i)
    return P


if __name__ == "__main__":
    B, S, E, HID, NH = 2, 8, 32, 64, 4
    key = jax.random.PRNGKey(0)
    kx, kc, kp = jax.random.split(key, 3)
    x = jax.random.normal(kx, (B, S, E), jnp.float32)
    x_cls = jax.random.normal(kc, (B, 1, E), jnp.float32)
    P = make_params(kp, E, HID)
    ref = jax.vmap(lambda xb, cb: ref_single(xb, cb, P, NH))(x, x_cls)

    # f32 path (exact erf GELU, matches PyTorch semantics).
    out = jax.block_until_ready(block_forward(x, x_cls, P, num_heads=NH))
    assert out.shape == (B, S, E)
    err = float(jnp.max(jnp.abs(out - ref)))
    assert err < 1e-4, f"f32 mismatch vs reference: {err}"

    # bf16 MXU-operand path (f32 accumulation / stats); loose tolerance.
    out_bf16 = jax.block_until_ready(
        block_forward(x, x_cls, P, num_heads=NH, compute_dtype=jnp.bfloat16))
    err_bf16 = float(jnp.max(jnp.abs(out_bf16 - ref)))
    assert err_bf16 < 0.15, f"bf16 mismatch vs reference: {err_bf16}"

    # tanh-approx GELU path (VALU relief on v6e/v7x); gated, loose tolerance.
    out_ag = jax.block_until_ready(
        block_forward(x, x_cls, P, num_heads=NH, approx_gelu=True))
    err_ag = float(jnp.max(jnp.abs(out_ag - ref)))
    assert err_ag < 0.1, f"approx-gelu mismatch vs reference: {err_ag}"

    # Ragged-S path: S not divisible by the 256-aligned tile exercises the
    # cdiv grid + masked tail (kernel 1) / padded tail (kernel 2).
    S2 = 272
    x2 = jax.random.normal(kx, (B, S2, E), jnp.float32)
    xc2 = jax.random.normal(kc, (B, 1, E), jnp.float32)
    ref2 = jax.vmap(lambda xb, cb: ref_single(xb, cb, P, NH))(x2, xc2)
    out2 = jax.block_until_ready(
        block_forward(x2, xc2, P, num_heads=NH, s_tile_main=256, s_tile_kv=256))
    err2 = float(jnp.max(jnp.abs(out2 - ref2)))
    assert err2 < 1e-4, f"ragged-S mismatch vs reference: {err2}"

    print("KERNEL_OK")
</pallas_src>

<mosaic_0001>
module attributes {stable_mosaic.version = 11 : i64} {
  func.func @_cls_kernel(%arg0: i32, %arg1: i32, %arg2: memref<1x8x32xf32, #tpu.memory_space<vmem>>, %arg3: memref<1x1x32xf32, #tpu.memory_space<vmem>>, %arg4: memref<32x32xf32, #tpu.memory_space<vmem>>, %arg5: memref<1x32xf32, #tpu.memory_space<vmem>>, %arg6: memref<32x32xf32, #tpu.memory_space<vmem>>, %arg7: memref<1x32xf32, #tpu.memory_space<vmem>>, %arg8: memref<32x32xf32, #tpu.memory_space<vmem>>, %arg9: memref<1x32xf32, #tpu.memory_space<vmem>>, %arg10: memref<32x32xf32, #tpu.memory_space<vmem>>, %arg11: memref<1x32xf32, #tpu.memory_space<vmem>>, %arg12: memref<32x128xf32, #tpu.memory_space<vmem>>, %arg13: memref<128x32xf32, #tpu.memory_space<vmem>>, %arg14: memref<1x32xf32, #tpu.memory_space<vmem>>, %arg15: memref<1x32xf32, #tpu.memory_space<vmem>>, %arg16: memref<32x128xf32, #tpu.memory_space<vmem>>, %arg17: memref<1x128xf32, #tpu.memory_space<vmem>>, %arg18: memref<128x32xf32, #tpu.memory_space<vmem>>, %arg19: memref<1x32xf32, #tpu.memory_space<vmem>>, %arg20: memref<1x32xf32, #tpu.memory_space<vmem>>, %arg21: memref<1x32xf32, #tpu.memory_space<vmem>>, %arg22: memref<1x1x32xf32, #tpu.memory_space<vmem>>, %arg23: memref<32x128xf32, #tpu.memory_space<vmem>>, %arg24: memref<1x128xf32, #tpu.memory_space<vmem>>, %arg25: memref<1x128xf32, #tpu.memory_space<vmem>>, %arg26: memref<1x128xf32, #tpu.memory_space<vmem>>, %arg27: memref<1x32xf32, #tpu.memory_space<vmem>>) attributes {dimension_semantics = [#tpu.dimension_semantics<parallel>, #tpu.dimension_semantics<arbitrary>], iteration_bounds = array<i64: 2, 1>, scalar_prefetch = 0 : i64, scratch_operands = 5 : i64, tpu.core_type = #tpu.core_type<tc>, window_params = [{transform_indices = @transform_0, window_bounds = array<i64: 1, 8, 32>}, {transform_indices = @transform_1, window_bounds = array<i64: 1, 1, 32>}, {pipeline_mode = #tpu.pipeline_mode<synchronous>, transform_indices = @transform_2, window_bounds = array<i64: 32, 32>}, {pipeline_mode = #tpu.pipeline_mode<synchronous>, transform_indices = @transform_3, window_bounds = array<i64: 1, 32>}, {pipeline_mode = #tpu.pipeline_mode<synchronous>, transform_indices = @transform_4, window_bounds = array<i64: 32, 32>}, {pipeline_mode = #tpu.pipeline_mode<synchronous>, transform_indices = @transform_5, window_bounds = array<i64: 1, 32>}, {pipeline_mode = #tpu.pipeline_mode<synchronous>, transform_indices = @transform_6, window_bounds = array<i64: 32, 32>}, {pipeline_mode = #tpu.pipeline_mode<synchronous>, transform_indices = @transform_7, window_bounds = array<i64: 1, 32>}, {pipeline_mode = #tpu.pipeline_mode<synchronous>, transform_indices = @transform_8, window_bounds = array<i64: 32, 32>}, {pipeline_mode = #tpu.pipeline_mode<synchronous>, transform_indices = @transform_9, window_bounds = array<i64: 1, 32>}, {pipeline_mode = #tpu.pipeline_mode<synchronous>, transform_indices = @transform_10, window_bounds = array<i64: 32, 128>}, {pipeline_mode = #tpu.pipeline_mode<synchronous>, transform_indices = @transform_11, window_bounds = array<i64: 128, 32>}, {pipeline_mode = #tpu.pipeline_mode<synchronous>, transform_indices = @transform_12, window_bounds = array<i64: 1, 32>}, {pipeline_mode = #tpu.pipeline_mode<synchronous>, transform_indices = @transform_13, window_bounds = array<i64: 1, 32>}, {pipeline_mode = #tpu.pipeline_mode<synchronous>, transform_indices = @transform_14, window_bounds = array<i64: 32, 128>}, {pipeline_mode = #tpu.pipeline_mode<synchronous>, transform_indices = @transform_15, window_bounds = array<i64: 1, 128>}, {pipeline_mode = #tpu.pipeline_mode<synchronous>, transform_indices = @transform_16, window_bounds = array<i64: 128, 32>}, {pipeline_mode = #tpu.pipeline_mode<synchronous>, transform_indices = @transform_17, window_bounds = array<i64: 1, 32>}, {pipeline_mode = #tpu.pipeline_mode<synchronous>, transform_indices = @transform_18, window_bounds = array<i64: 1, 32>}, {pipeline_mode = #tpu.pipeline_mode<synchronous>, transform_indices = @transform_19, window_bounds = array<i64: 1, 32>}, {transform_indices = @transform_20, window_bounds = array<i64: 1, 1, 32>}]} {
    %c0_i32 = arith.constant 0 : i32
    %0 = arith.cmpi eq, %arg1, %c0_i32 : i32
    %1 = arith.extui %0 : i1 to i32
    %c0_i32_0 = arith.constant 0 : i32
    %2 = arith.cmpi ne, %1, %c0_i32_0 : i32
    scf.if %2 {
      %c0_33 = arith.constant 0 : index
      %c0_34 = arith.constant 0 : index
      %c0_35 = arith.constant 0 : index
      %44 = vector.load %arg3[%c0_33, %c0_34, %c0_35] : memref<1x1x32xf32, #tpu.memory_space<vmem>>, vector<1x1x32xf32>
      %45 = vector.shape_cast %44 : vector<1x1x32xf32> to vector<1x32xf32>
      %c0_36 = arith.constant 0 : index
      %c0_37 = arith.constant 0 : index
      %46 = vector.load %arg4[%c0_36, %c0_37] : memref<32x32xf32, #tpu.memory_space<vmem>>, vector<32x32xf32>
      %cst_38 = arith.constant dense<0.000000e+00> : vector<1x32xf32>
      %47 = tpu.matmul %45, %46, %cst_38 {dimension_numbers = #tpu.dot_dimension_numbers<[1], [0], [0], [1], [0, 0, 1, 1], [], []>} : vector<1x32xf32>, vector<32x32xf32>, vector<1x32xf32> -> vector<1x32xf32>
      %c0_39 = arith.constant 0 : index
      %c0_40 = arith.constant 0 : index
      %48 = vector.load %arg5[%c0_39, %c0_40] : memref<1x32xf32, #tpu.memory_space<vmem>>, vector<1x32xf32>
      %49 = arith.addf %47, %48 : vector<1x32xf32>
      %cst_41 = arith.constant 0.353553385 : f32
      %50 = vector.broadcast %cst_41 : f32 to vector<1x32xf32>
      %51 = arith.mulf %49, %50 : vector<1x32xf32>
      %c0_42 = arith.constant 0 : index
      %c0_43 = arith.constant 0 : index
      %52 = vector.load %arg6[%c0_42, %c0_43] : memref<32x32xf32, #tpu.memory_space<vmem>>, vector<32x32xf32>
      %53 = vector.broadcast %51 : vector<1x32xf32> to vector<32x32xf32>
      %54 = arith.mulf %52, %53 : vector<32x32xf32>
      %c0_44 = arith.constant 0 : index
      %c0_45 = arith.constant 0 : index
      %55 = vector.load %arg12[%c0_44, %c0_45] : memref<32x128xf32, #tpu.memory_space<vmem>>, vector<32x128xf32>
      %cst_46 = arith.constant dense<0.000000e+00> : vector<32x128xf32>
      %56 = tpu.matmul %54, %55, %cst_46 {dimension_numbers = #tpu.dot_dimension_numbers<[1], [0], [0], [1], [0, 0, 1, 1], [], []>} : vector<32x32xf32>, vector<32x128xf32>, vector<32x128xf32> -> vector<32x128xf32>
      %c0_47 = arith.constant 0 : index
      %c0_48 = arith.constant 0 : index
      %57 = vector.load %arg23[%c0_47, %c0_48] : memref<32x128xf32, #tpu.memory_space<vmem>>, vector<32x128xf32>
      tpu.vector_store %arg23[%c0_47, %c0_48], %56 {strides = array<i32>} : memref<32x128xf32, #tpu.memory_space<vmem>>, vector<32x128xf32>,
      %c0_49 = arith.constant 0 : index
      %c0_50 = arith.constant 0 : index
      %58 = vector.load %arg7[%c0_49, %c0_50] : memref<1x32xf32, #tpu.memory_space<vmem>>, vector<1x32xf32>
      %59 = arith.mulf %51, %58 : vector<1x32xf32>
      %c0_51 = arith.constant 0 : index
      %c0_52 = arith.constant 0 : index
      %60 = vector.load %arg12[%c0_51, %c0_52] : memref<32x128xf32, #tpu.memory_space<vmem>>, vector<32x128xf32>
      %cst_53 = arith.constant dense<0.000000e+00> : vector<1x128xf32>
      %61 = tpu.matmul %59, %60, %cst_53 {dimension_numbers = #tpu.dot_dimension_numbers<[1], [0], [0], [1], [0, 0, 1, 1], [], []>} : vector<1x32xf32>, vector<32x128xf32>, vector<1x128xf32> -> vector<1x128xf32>
      %c0_54 = arith.constant 0 : index
      %c0_55 = arith.constant 0 : index
      %62 = vector.load %arg24[%c0_54, %c0_55] : memref<1x128xf32, #tpu.memory_space<vmem>>, vector<1x128xf32>
      tpu.vector_store %arg24[%c0_54, %c0_55], %61 {strides = array<i32>} : memref<1x128xf32, #tpu.memory_space<vmem>>, vector<1x128xf32>,
      %cst_56 = arith.constant 0xFF800000 : f32
      %63 = vector.broadcast %cst_56 : f32 to vector<1x128xf32>
      %c0_57 = arith.constant 0 : index
      %c0_58 = arith.constant 0 : index
      %64 = vector.load %arg25[%c0_57, %c0_58] : memref<1x128xf32, #tpu.memory_space<vmem>>, vector<1x128xf32>
      tpu.vector_store %arg25[%c0_57, %c0_58], %63 {strides = array<i32>} : memref<1x128xf32, #tpu.memory_space<vmem>>, vector<1x128xf32>,
      %cst_59 = arith.constant 0.000000e+00 : f32
      %65 = vector.broadcast %cst_59 : f32 to vector<1x128xf32>
      %c0_60 = arith.constant 0 : index
      %c0_61 = arith.constant 0 : index
      %66 = vector.load %arg26[%c0_60, %c0_61] : memref<1x128xf32, #tpu.memory_space<vmem>>, vector<1x128xf32>
      tpu.vector_store %arg26[%c0_60, %c0_61], %65 {strides = array<i32>} : memref<1x128xf32, #tpu.memory_space<vmem>>, vector<1x128xf32>,
      %cst_62 = arith.constant 0.000000e+00 : f32
      %67 = vector.broadcast %cst_62 : f32 to vector<1x32xf32>
      %c0_63 = arith.constant 0 : index
      %c0_64 = arith.constant 0 : index
      %68 = vector.load %arg27[%c0_63, %c0_64] : memref<1x32xf32, #tpu.memory_space<vmem>>, vector<1x32xf32>
      tpu.vector_store %arg27[%c0_63, %c0_64], %67 {strides = array<i32>} : memref<1x32xf32, #tpu.memory_space<vmem>>, vector<1x32xf32>,
    } else {
    }
    %c0 = arith.constant 0 : index
    %c0_1 = arith.constant 0 : index
    %c0_2 = arith.constant 0 : index
    %3 = vector.load %arg2[%c0, %c0_1, %c0_2] : memref<1x8x32xf32, #tpu.memory_space<vmem>>, vector<1x8x32xf32>
    %4 = vector.shape_cast %3 : vector<1x8x32xf32> to vector<8x32xf32>
    %c0_3 = arith.constant 0 : index
    %c0_4 = arith.constant 0 : index
    %5 = vector.load %arg8[%c0_3, %c0_4] : memref<32x32xf32, #tpu.memory_space<vmem>>, vector<32x32xf32>
    %cst = arith.constant dense<0.000000e+00> : vector<8x32xf32>
    %6 = tpu.matmul %4, %5, %cst {dimension_numbers = #tpu.dot_dimension_numbers<[1], [0], [0], [1], [0, 0, 1, 1], [], []>} : vector<8x32xf32>, vector<32x32xf32>, vector<8x32xf32> -> vector<8x32xf32>
    %c0_5 = arith.constant 0 : index
    %c0_6 = arith.constant 0 : index
    %7 = vector.load %arg9[%c0_5, %c0_6] : memref<1x32xf32, #tpu.memory_space<vmem>>, vector<1x32xf32>
    %8 = vector.broadcast %7 : vector<1x32xf32> to vector<8x32xf32>
    %9 = arith.addf %6, %8 : vector<8x32xf32>
    %c0_7 = arith.constant 0 : index
    %c0_8 = arith.constant 0 : index
    %10 = vector.load %arg23[%c0_7, %c0_8] : memref<32x128xf32, #tpu.memory_space<vmem>>, vector<32x128xf32>
    %cst_9 = arith.constant dense<0.000000e+00> : vector<8x128xf32>
    %11 = tpu.matmul %4, %10, %cst_9 {dimension_numbers = #tpu.dot_dimension_numbers<[1], [0], [0], [1], [0, 0, 1, 1], [], []>} : vector<8x32xf32>, vector<32x128xf32>, vector<8x128xf32> -> vector<8x128xf32>
    %c0_10 = arith.constant 0 : index
    %c0_11 = arith.constant 0 : index
    %12 = vector.load %arg24[%c0_10, %c0_11] : memref<1x128xf32, #tpu.memory_space<vmem>>, vector<1x128xf32>
    %13 = vector.broadcast %12 : vector<1x128xf32> to vector<8x128xf32>
    %14 = arith.addf %11, %13 : vector<8x128xf32>
    %c0_12 = arith.constant 0 : index
    %c0_13 = arith.constant 0 : index
    %15 = vector.load %arg25[%c0_12, %c0_13] : memref<1x128xf32, #tpu.memory_space<vmem>>, vector<1x128xf32>
    %cst_14 = arith.constant dense<0xFF800000> : vector<128xf32>
    %16 = vector.multi_reduction <maximumf>, %14, %cst_14 [0] : vector<8x128xf32> to vector<128xf32>
    %17 = vector.shape_cast %16 : vector<128xf32> to vector<1x128xf32>
    %18 = arith.maximumf %15, %17 : vector<1x128xf32>
    %19 = arith.subf %15, %18 : vector<1x128xf32>
    %20 = math.exp %19 : vector<1x128xf32>
    %21 = vector.broadcast %18 : vector<1x128xf32> to vector<8x128xf32>
    %22 = arith.subf %14, %21 : vector<8x128xf32>
    %23 = math.exp %22 : vector<8x128xf32>
    %c0_15 = arith.constant 0 : index
    %c0_16 = arith.constant 0 : index
    %24 = vector.load %arg26[%c0_15, %c0_16] : memref<1x128xf32, #tpu.memory_space<vmem>>, vector<1x128xf32>
    %25 = arith.mulf %20, %24 : vector<1x128xf32>
    %cst_17 = arith.constant dense<0.000000e+00> : vector<128xf32>
    %26 = vector.multi_reduction <add>, %23, %cst_17 [0] : vector<8x128xf32> to vector<128xf32>
    %27 = vector.shape_cast %26 : vector<128xf32> to vector<1x128xf32>
    %28 = arith.addf %25, %27 : vector<1x128xf32>
    %c0_18 = arith.constant 0 : index
    %c0_19 = arith.constant 0 : index
    %29 = vector.load %arg26[%c0_18, %c0_19] : memref<1x128xf32, #tpu.memory_space<vmem>>, vector<1x128xf32>
    tpu.vector_store %arg26[%c0_18, %c0_19], %28 {strides = array<i32>} : memref<1x128xf32, #tpu.memory_space<vmem>>, vector<1x128xf32>,
    %c0_20 = arith.constant 0 : index
    %c0_21 = arith.constant 0 : index
    %30 = vector.load %arg13[%c0_20, %c0_21] : memref<128x32xf32, #tpu.memory_space<vmem>>, vector<128x32xf32>
    %cst_22 = arith.constant dense<0.000000e+00> : vector<8x32xf32>
    %31 = tpu.matmul %23, %30, %cst_22 {dimension_numbers = #tpu.dot_dimension_numbers<[1], [0], [0], [1], [0, 0, 1, 1], [], []>} : vector<8x128xf32>, vector<128x32xf32>, vector<8x32xf32> -> vector<8x32xf32>
    %cst_23 = arith.constant dense<0.000000e+00> : vector<1x32xf32>
    %32 = tpu.matmul %20, %30, %cst_23 {dimension_numbers = #tpu.dot_dimension_numbers<[1], [0], [0], [1], [0, 0, 1, 1], [], []>} : vector<1x128xf32>, vector<128x32xf32>, vector<1x32xf32> -> vector<1x32xf32>
    %c0_24 = arith.constant 0 : index
    %c0_25 = arith.constant 0 : index
    %33 = vector.load %arg27[%c0_24, %c0_25] : memref<1x32xf32, #tpu.memory_space<vmem>>, vector<1x32xf32>
    %34 = arith.mulf %32, %33 : vector<1x32xf32>
    %35 = arith.mulf %31, %9 : vector<8x32xf32>
    %cst_26 = arith.constant dense<0.000000e+00> : vector<32xf32>
    %36 = vector.multi_reduction <add>, %35, %cst_26 [0] : vector<8x32xf32> to vector<32xf32>
    %37 = vector.shape_cast %36 : vector<32xf32> to vector<1x32xf32>
    %38 = arith.addf %34, %37 : vector<1x32xf32>
    %c0_27 = arith.constant 0 : index
    %c0_28 = arith.constant 0 : index
    %39 = vector.load %arg27[%c0_27, %c0_28] : memref<1x32xf32, #tpu.memory_space<vmem>>, vector<1x32xf32>
    tpu.vector_store %arg27[%c0_27, %c0_28], %38 {strides = array<i32>} : memref<1x32xf32, #tpu.memory_space<vmem>>, vector<1x32xf32>,
    %c0_29 = arith.constant 0 : index
    %c0_30 = arith.constant 0 : index
    %40 = vector.load %arg25[%c0_29, %c0_30] : memref<1x128xf32, #tpu.memory_space<vmem>>, vector<1x128xf32>
    tpu.vector_store %arg25[%c0_29, %c0_30], %18 {strides = array<i32>} : memref<1x128xf32, #tpu.memory_space<vmem>>, vector<1x128xf32>,
    %c0_i32_31 = arith.constant 0 : i32
    %41 = arith.cmpi eq, %arg1, %c0_i32_31 : i32
    %42 = arith.extui %41 : i1 to i32
    %c0_i32_32 = arith.constant 0 : i32
    %43 = arith.cmpi ne, %42, %c0_i32_32 : i32
    scf.if %43 {
      %c0_33 = arith.constant 0 : index
      %c0_34 = arith.constant 0 : index
      %44 = vector.load %arg26[%c0_33, %c0_34] : memref<1x128xf32, #tpu.memory_space<vmem>>, vector<1x128xf32>
      %c0_35 = arith.constant 0 : index
      %c0_36 = arith.constant 0 : index
      %45 = vector.load %arg13[%c0_35, %c0_36] : memref<128x32xf32, #tpu.memory_space<vmem>>, vector<128x32xf32>
      %cst_37 = arith.constant dense<0.000000e+00> : vector<1x32xf32>
      %46 = tpu.matmul %44, %45, %cst_37 {dimension_numbers = #tpu.dot_dimension_numbers<[1], [0], [0], [1], [0, 0, 1, 1], [], []>} : vector<1x128xf32>, vector<128x32xf32>, vector<1x32xf32> -> vector<1x32xf32>
      %c0_38 = arith.constant 0 : index
      %c0_39 = arith.constant 0 : index
      %47 = vector.load %arg27[%c0_38, %c0_39] : memref<1x32xf32, #tpu.memory_space<vmem>>, vector<1x32xf32>
      %48 = tpu.reciprocal %46 : vector<1x32xf32> -> vector<1x32xf32>
      %49 = arith.mulf %47, %48 : vector<1x32xf32>
      %c0_40 = arith.constant 0 : index
      %c0_41 = arith.constant 0 : index
      %50 = vector.load %arg10[%c0_40, %c0_41] : memref<32x32xf32, #tpu.memory_space<vmem>>, vector<32x32xf32>
      %cst_42 = arith.constant dense<0.000000e+00> : vector<1x32xf32>
      %51 = tpu.matmul %49, %50, %cst_42 {dimension_numbers = #tpu.dot_dimension_numbers<[1], [0], [0], [1], [0, 0, 1, 1], [], []>} : vector<1x32xf32>, vector<32x32xf32>, vector<1x32xf32> -> vector<1x32xf32>
      %c0_43 = arith.constant 0 : index
      %c0_44 = arith.constant 0 : index
      %52 = vector.load %arg11[%c0_43, %c0_44] : memref<1x32xf32, #tpu.memory_space<vmem>>, vector<1x32xf32>
      %53 = arith.addf %51, %52 : vector<1x32xf32>
      %c0_45 = arith.constant 0 : index
      %c0_46 = arith.constant 0 : index
      %c0_47 = arith.constant 0 : index
      %54 = vector.load %arg3[%c0_45, %c0_46, %c0_47] : memref<1x1x32xf32, #tpu.memory_space<vmem>>, vector<1x1x32xf32>
      %55 = vector.shape_cast %54 : vector<1x1x32xf32> to vector<1x32xf32>
      %56 = arith.addf %55, %53 : vector<1x32xf32>
      %c0_48 = arith.constant 0 : index
      %c0_49 = arith.constant 0 : index
      %57 = vector.load %arg14[%c0_48, %c0_49] : memref<1x32xf32, #tpu.memory_space<vmem>>, vector<1x32xf32>
      %c0_50 = arith.constant 0 : index
      %c0_51 = arith.constant 0 : index
      %58 = vector.load %arg15[%c0_50, %c0_51] : memref<1x32xf32, #tpu.memory_space<vmem>>, vector<1x32xf32>
      %cst_52 = arith.constant dense<0.000000e+00> : vector<1xf32>
      %59 = vector.multi_reduction <add>, %56, %cst_52 [1] : vector<1x32xf32> to vector<1xf32>
      %60 = vector.shape_cast %59 : vector<1xf32> to vector<1x1xf32>
      %cst_53 = arith.constant 3.200000e+01 : f32
      %61 = vector.broadcast %cst_53 : f32 to vector<1x1xf32>
      %62 = arith.divf %60, %61 : vector<1x1xf32>
      %63 = arith.mulf %56, %56 : vector<1x32xf32>
      %cst_54 = arith.constant dense<0.000000e+00> : vector<1xf32>
      %64 = vector.multi_reduction <add>, %63, %cst_54 [1] : vector<1x32xf32> to vector<1xf32>
      %65 = vector.shape_cast %64 : vector<1xf32> to vector<1x1xf32>
      %cst_55 = arith.constant 3.200000e+01 : f32
      %66 = vector.broadcast %cst_55 : f32 to vector<1x1xf32>
      %67 = arith.divf %65, %66 : vector<1x1xf32>
      %68 = arith.mulf %62, %62 : vector<1x1xf32>
      %69 = arith.subf %67, %68 : vector<1x1xf32>
      %70 = vector.broadcast %62 : vector<1x1xf32> to vector<1x32xf32>
      %71 = arith.subf %56, %70 : vector<1x32xf32>
      %cst_56 = arith.constant 9.99999974E-6 : f32
      %72 = vector.broadcast %cst_56 : f32 to vector<1x1xf32>
      %73 = arith.addf %69, %72 : vector<1x1xf32>
      %74 = math.rsqrt %73 : vector<1x1xf32>
      %75 = vector.broadcast %74 : vector<1x1xf32> to vector<1x32xf32>
      %76 = arith.mulf %71, %75 : vector<1x32xf32>
      %77 = arith.mulf %76, %57 : vector<1x32xf32>
      %78 = arith.addf %77, %58 : vector<1x32xf32>
      %c0_57 = arith.constant 0 : index
      %c0_58 = arith.constant 0 : index
      %79 = vector.load %arg16[%c0_57, %c0_58] : memref<32x128xf32, #tpu.memory_space<vmem>>, vector<32x128xf32>
      %cst_59 = arith.constant dense<0.000000e+00> : vector<1x128xf32>
      %80 = tpu.matmul %78, %79, %cst_59 {dimension_numbers = #tpu.dot_dimension_numbers<[1], [0], [0], [1], [0, 0, 1, 1], [], []>} : vector<1x32xf32>, vector<32x128xf32>, vector<1x128xf32> -> vector<1x128xf32>
      %c0_60 = arith.constant 0 : index
      %c0_61 = arith.constant 0 : index
      %81 = vector.load %arg17[%c0_60, %c0_61] : memref<1x128xf32, #tpu.memory_space<vmem>>, vector<1x128xf32>
      %82 = arith.addf %80, %81 : vector<1x128xf32>
      %cst_62 = arith.constant 5.000000e-01 : f32
      %83 = vector.broadcast %cst_62 : f32 to vector<1x128xf32>
      %84 = arith.mulf %83, %82 : vector<1x128xf32>
      %cst_63 = arith.constant 0.707106769 : f32
      %85 = vector.broadcast %cst_63 : f32 to vector<1x128xf32>
      %86 = arith.mulf %82, %85 : vector<1x128xf32>
      %87 = math.erf %86 : vector<1x128xf32>
      %cst_64 = arith.constant 1.000000e+00 : f32
      %88 = vector.broadcast %cst_64 : f32 to vector<1x128xf32>
      %89 = arith.addf %88, %87 : vector<1x128xf32>
      %90 = arith.mulf %84, %89 : vector<1x128xf32>
      %c0_65 = arith.constant 0 : index
      %c0_66 = arith.constant 0 : index
      %91 = vector.load %arg18[%c0_65, %c0_66] : memref<128x32xf32, #tpu.memory_space<vmem>>, vector<128x32xf32>
      %cst_67 = arith.constant dense<0.000000e+00> : vector<1x32xf32>
      %92 = tpu.matmul %90, %91, %cst_67 {dimension_numbers = #tpu.dot_dimension_numbers<[1], [0], [0], [1], [0, 0, 1, 1], [], []>} : vector<1x128xf32>, vector<128x32xf32>, vector<1x32xf32> -> vector<1x32xf32>
      %c0_68 = arith.constant 0 : index
      %c0_69 = arith.constant 0 : index
      %93 = vector.load %arg19[%c0_68, %c0_69] : memref<1x32xf32, #tpu.memory_space<vmem>>, vector<1x32xf32>
      %94 = arith.addf %92, %93 : vector<1x32xf32>
      %95 = arith.addf %94, %78 : vector<1x32xf32>
      %c0_70 = arith.constant 0 : index
      %c0_71 = arith.constant 0 : index
      %96 = vector.load %arg20[%c0_70, %c0_71] : memref<1x32xf32, #tpu.memory_space<vmem>>, vector<1x32xf32>
      %c0_72 = arith.constant 0 : index
      %c0_73 = arith.constant 0 : index
      %97 = vector.load %arg21[%c0_72, %c0_73] : memref<1x32xf32, #tpu.memory_space<vmem>>, vector<1x32xf32>
      %cst_74 = arith.constant dense<0.000000e+00> : vector<1xf32>
      %98 = vector.multi_reduction <add>, %95, %cst_74 [1] : vector<1x32xf32> to vector<1xf32>
      %99 = vector.shape_cast %98 : vector<1xf32> to vector<1x1xf32>
      %cst_75 = arith.constant 3.200000e+01 : f32
      %100 = vector.broadcast %cst_75 : f32 to vector<1x1xf32>
      %101 = arith.divf %99, %100 : vector<1x1xf32>
      %102 = arith.mulf %95, %95 : vector<1x32xf32>
      %cst_76 = arith.constant dense<0.000000e+00> : vector<1xf32>
      %103 = vector.multi_reduction <add>, %102, %cst_76 [1] : vector<1x32xf32> to vector<1xf32>
      %104 = vector.shape_cast %103 : vector<1xf32> to vector<1x1xf32>
      %cst_77 = arith.constant 3.200000e+01 : f32
      %105 = vector.broadcast %cst_77 : f32 to vector<1x1xf32>
      %106 = arith.divf %104, %105 : vector<1x1xf32>
      %107 = arith.mulf %101, %101 : vector<1x1xf32>
      %108 = arith.subf %106, %107 : vector<1x1xf32>
      %109 = vector.broadcast %101 : vector<1x1xf32> to vector<1x32xf32>
      %110 = arith.subf %95, %109 : vector<1x32xf32>
      %cst_78 = arith.constant 9.99999974E-6 : f32
      %111 = vector.broadcast %cst_78 : f32 to vector<1x1xf32>
      %112 = arith.addf %108, %111 : vector<1x1xf32>
      %113 = math.rsqrt %112 : vector<1x1xf32>
      %114 = vector.broadcast %113 : vector<1x1xf32> to vector<1x32xf32>
      %115 = arith.mulf %110, %114 : vector<1x32xf32>
      %116 = arith.mulf %115, %96 : vector<1x32xf32>
      %117 = arith.addf %116, %97 : vector<1x32xf32>
      %c0_79 = arith.constant 0 : index
      %c0_80 = arith.constant 0 : index
      %c0_81 = arith.constant 0 : index
      %118 = vector.load %arg22[%c0_79, %c0_80, %c0_81] : memref<1x1x32xf32, #tpu.memory_space<vmem>>, vector<1x1x32xf32>
      %119 = vector.shape_cast %118 : vector<1x1x32xf32> to vector<1x32xf32>
      %120 = vector.shape_cast %117 : vector<1x32xf32> to vector<1x1x32xf32>
      tpu.vector_store %arg22[%c0_79, %c0_80, %c0_81], %120 {strides = array<i32>} : memref<1x1x32xf32, #tpu.memory_space<vmem>>, vector<1x1x32xf32>,
    } else {
    }
    return
  }
  func.func @transform_0(%arg0: i32, %arg1: i32) -> (i32, i32, i32) {
    %c0_i32 = arith.constant 0 : i32
    %c0_i32_0 = arith.constant 0 : i32
    return %arg0, %arg1, %c0_i32 : i32, i32, i32
  }
  func.func @transform_1(%arg0: i32, %arg1: i32) -> (i32, i32, i32) {
    %c0_i32 = arith.constant 0 : i32
    %c0_i32_0 = arith.constant 0 : i32
    %c0_i32_1 = arith.constant 0 : i32
    return %arg0, %c0_i32, %c0_i32_0 : i32, i32, i32
  }
  func.func @transform_2(%arg0: i32, %arg1: i32) -> (i32, i32) {
    %c0_i32 = arith.constant 0 : i32
    %c0_i32_0 = arith.constant 0 : i32
    %c0_i32_1 = arith.constant 0 : i32
    return %c0_i32, %c0_i32_0 : i32, i32
  }
  func.func @transform_3(%arg0: i32, %arg1: i32) -> (i32, i32) {
    %c0_i32 = arith.constant 0 : i32
    %c0_i32_0 = arith.constant 0 : i32
    %c0_i32_1 = arith.constant 0 : i32
    return %c0_i32, %c0_i32_0 : i32, i32
  }
  func.func @transform_4(%arg0: i32, %arg1: i32) -> (i32, i32) {
    %c0_i32 = arith.constant 0 : i32
    %c0_i32_0 = arith.constant 0 : i32
    %c0_i32_1 = arith.constant 0 : i32
    return %c0_i32, %c0_i32_0 : i32, i32
  }
  func.func @transform_5(%arg0: i32, %arg1: i32) -> (i32, i32) {
    %c0_i32 = arith.constant 0 : i32
    %c0_i32_0 = arith.constant 0 : i32
    %c0_i32_1 = arith.constant 0 : i32
    return %c0_i32, %c0_i32_0 : i32, i32
  }
  func.func @transform_6(%arg0: i32, %arg1: i32) -> (i32, i32) {
    %c0_i32 = arith.constant 0 : i32
    %c0_i32_0 = arith.constant 0 : i32
    %c0_i32_1 = arith.constant 0 : i32
    return %c0_i32, %c0_i32_0 : i32, i32
  }
  func.func @transform_7(%arg0: i32, %arg1: i32) -> (i32, i32) {
    %c0_i32 = arith.constant 0 : i32
    %c0_i32_0 = arith.constant 0 : i32
    %c0_i32_1 = arith.constant 0 : i32
    return %c0_i32, %c0_i32_0 : i32, i32
  }
  func.func @transform_8(%arg0: i32, %arg1: i32) -> (i32, i32) {
    %c0_i32 = arith.constant 0 : i32
    %c0_i32_0 = arith.constant 0 : i32
    %c0_i32_1 = arith.constant 0 : i32
    return %c0_i32, %c0_i32_0 : i32, i32
  }
  func.func @transform_9(%arg0: i32, %arg1: i32) -> (i32, i32) {
    %c0_i32 = arith.constant 0 : i32
    %c0_i32_0 = arith.constant 0 : i32
    %c0_i32_1 = arith.constant 0 : i32
    return %c0_i32, %c0_i32_0 : i32, i32
  }
  func.func @transform_10(%arg0: i32, %arg1: i32) -> (i32, i32) {
    %c0_i32 = arith.constant 0 : i32
    %c0_i32_0 = arith.constant 0 : i32
    %c0_i32_1 = arith.constant 0 : i32
    return %c0_i32, %c0_i32_0 : i32, i32
  }
  func.func @transform_11(%arg0: i32, %arg1: i32) -> (i32, i32) {
    %c0_i32 = arith.constant 0 : i32
    %c0_i32_0 = arith.constant 0 : i32
    %c0_i32_1 = arith.constant 0 : i32
    return %c0_i32, %c0_i32_0 : i32, i32
  }
  func.func @transform_12(%arg0: i32, %arg1: i32) -> (i32, i32) {
    %c0_i32 = arith.constant 0 : i32
    %c0_i32_0 = arith.constant 0 : i32
    %c0_i32_1 = arith.constant 0 : i32
    return %c0_i32, %c0_i32_0 : i32, i32
  }
  func.func @transform_13(%arg0: i32, %arg1: i32) -> (i32, i32) {
    %c0_i32 = arith.constant 0 : i32
    %c0_i32_0 = arith.constant 0 : i32
    %c0_i32_1 = arith.constant 0 : i32
    return %c0_i32, %c0_i32_0 : i32, i32
  }
  func.func @transform_14(%arg0: i32, %arg1: i32) -> (i32, i32) {
    %c0_i32 = arith.constant 0 : i32
    %c0_i32_0 = arith.constant 0 : i32
    %c0_i32_1 = arith.constant 0 : i32
    return %c0_i32, %c0_i32_0 : i32, i32
  }
  func.func @transform_15(%arg0: i32, %arg1: i32) -> (i32, i32) {
    %c0_i32 = arith.constant 0 : i32
    %c0_i32_0 = arith.constant 0 : i32
    %c0_i32_1 = arith.constant 0 : i32
    return %c0_i32, %c0_i32_0 : i32, i32
  }
  func.func @transform_16(%arg0: i32, %arg1: i32) -> (i32, i32) {
    %c0_i32 = arith.constant 0 : i32
    %c0_i32_0 = arith.constant 0 : i32
    %c0_i32_1 = arith.constant 0 : i32
    return %c0_i32, %c0_i32_0 : i32, i32
  }
  func.func @transform_17(%arg0: i32, %arg1: i32) -> (i32, i32) {
    %c0_i32 = arith.constant 0 : i32
    %c0_i32_0 = arith.constant 0 : i32
    %c0_i32_1 = arith.constant 0 : i32
    return %c0_i32, %c0_i32_0 : i32, i32
  }
  func.func @transform_18(%arg0: i32, %arg1: i32) -> (i32, i32) {
    %c0_i32 = arith.constant 0 : i32
    %c0_i32_0 = arith.constant 0 : i32
    %c0_i32_1 = arith.constant 0 : i32
    return %c0_i32, %c0_i32_0 : i32, i32
  }
  func.func @transform_19(%arg0: i32, %arg1: i32) -> (i32, i32) {
    %c0_i32 = arith.constant 0 : i32
    %c0_i32_0 = arith.constant 0 : i32
    %c0_i32_1 = arith.constant 0 : i32
    return %c0_i32, %c0_i32_0 : i32, i32
  }
  func.func @transform_20(%arg0: i32, %arg1: i32) -> (i32, i32, i32) {
    %c0_i32 = arith.constant 0 : i32
    %c0_i32_0 = arith.constant 0 : i32
    %c0_i32_1 = arith.constant 0 : i32
    return %arg0, %c0_i32, %c0_i32_0 : i32, i32, i32
  }
}

</mosaic_0001>

<bundles_post_ra>
// kernel: tpu_custom_call.1
= control target key start
LH: loop header
LB: loop body
LE: loop exit
PB: predicated region body
PF: predicated region fallthrough
CT: control target
= control target key end

     0   :  { %s2984_s0 = inlined_call_operand.vmem [shape: f32[2,8,32], index: 0, kind: input, shape index: {}]   ;;  %s2985_s1 = inlined_call_operand.vmem [shape: f32[2,1,32], index: 1, kind: input, shape index: {}]   ;;  %s2986_s2 = inlined_call_operand.vmem [shape: f32[32,32], index: 2, kind: input, shape index: {}]   ;;  %s2987_s3 = inlined_call_operand.vmem [shape: f32[1,32], index: 3, kind: input, shape index: {}]   ;;  %s2988_s4 = inlined_call_operand.vmem [shape: f32[32,32], index: 4, kind: input, shape index: {}]   ;;  %s2989_s5 = inlined_call_operand.vmem [shape: f32[1,32], index: 5, kind: input, shape index: {}]   ;;  %s2990_s6 = inlined_call_operand.vmem [shape: f32[32,32], index: 6, kind: input, shape index: {}]   ;;  %s2991_s7 = inlined_call_operand.vmem [shape: f32[1,32], index: 7, kind: input, shape index: {}]   ;;  %s2992_s8 = inlined_call_operand.vmem [shape: f32[32,32], index: 8, kind: input, shape index: {}]   ;;  %s2993_s9 = inlined_call_operand.vmem [shape: f32[1,32], index: 9, kind: input, shape index: {}]   ;;  %s2994_s10 = inlined_call_operand.vmem [shape: f32[32,128], index: 10, kind: input, shape index: {}]   ;;  %s2995_s11 = inlined_call_operand.vmem [shape: f32[128,32], index: 11, kind: input, shape index: {}]   ;;  %s2996_s12 = inlined_call_operand.vmem [shape: f32[1,32], index: 12, kind: input, shape index: {}]   ;;  %s2997_s13 = inlined_call_operand.vmem [shape: f32[1,32], index: 13, kind: input, shape index: {}]   ;;  %s2998_s14 = inlined_call_operand.vmem [shape: f32[32,128], index: 14, kind: input, shape index: {}]   ;;  %s2999_s15 = inlined_call_operand.vmem [shape: f32[1,128], index: 15, kind: input, shape index: {}]   ;;  %s3000_s16 = inlined_call_operand.vmem [shape: f32[128,32], index: 16, kind: input, shape index: {}]   ;;  %s3001_s17 = inlined_call_operand.vmem [shape: f32[1,32], index: 17, kind: input, shape index: {}]   ;;  %s3002_s18 = inlined_call_operand.vmem [shape: f32[1,32], index: 18, kind: input, shape index: {}]   ;;  %s3003_s19 = inlined_call_operand.vmem [shape: f32[1,32], index: 19, kind: input, shape index: {}]   ;;  %s3004_s20 = inlined_call_operand.hbm [shape: f32[2,1,32], index: 20, kind: output, shape index: {}]  }
   0x1   :  { %3012 = sst [smem:[#allocation13_spill]] %s2984_s0 }
   0x2   :  { %3013 = sst [smem:[#allocation14_spill]] %s2985_s1 }
   0x3   :  { %3014 = sst [smem:[#allocation15_spill]] %s2986_s2 }
   0x4   :  { %3015 = sst [smem:[#allocation16_spill]] %s2987_s3 }
   0x5   :  { %3016 = sst [smem:[#allocation17_spill]] %s2988_s4 }
   0x6   :  { %3017 = sst [smem:[#allocation18_spill]] %s2989_s5 }
   0x7   :  { %3018 = sst [smem:[#allocation19_spill]] %s2990_s6 }
   0x8   :  { %3019 = sst [smem:[#allocation20_spill]] %s2991_s7 }
   0x9   :  { %3020 = sst [smem:[#allocation21_spill]] %s2994_s10 }
   0xa   :  { %3021 = sst [smem:[#allocation22_spill]] %s3002_s18 }
   0xb   :  { %3022 = sst [smem:[#allocation23_spill]] %s3003_s19 }
   0xc   :  { %3023 = sst [smem:[#allocation24_spill]] %s3004_s20 }
   0xd   :  { %25 = vsyncpa [#allocation8], 0 }
   0xe   :  { %27 = vsyncpa [#allocation8 + $0x1], 0  ;;  %s2534_s1 = smov 0   ;;  %s2536_s22 = smov 0  }
   0xf   :  { %s2538_s23 = smov 0   ;;  %s2540_s24 = smov 0  }
  0x10   :  { %s2542_s2 = smov 0   ;;  %s2544_s25 = smov 0  }
  0x11 LB: > { %3024 = sst [smem:[#allocation10_spill]] %s2402_s1  ;;  %s1786_s3 = sadd.s32 4294967295, %s2422_s25   ;;  %s2422_s25 = sphi %s2544_s25, %s33_s25   ;;  %s2418_s2 = sphi %s2542_s2, %s3044_s2   ;;  %s2414_s24 = sphi %s2540_s24, %s3043_s24   ;;  %s2410_s23 = sphi %s2538_s23, %s3047_s23   ;;  %s2406_s22 = sphi %s2536_s22, %s3046_s22   ;;  %s2402_s1 = sphi %s2534_s1, %s3045_s1  }
  0x12   : > { %3025 = sst [smem:[#allocation11_spill]] %s2418_s2  ;;  %s1787_s26 = sadd.s32 4294967294, %s2422_s25  }
  0x13   : > { %s45_s27 = sadd.s32 1, %s2418_s2  ;;  %s484_s28 = sadd.s32 1, %s2410_s23 }
  0x14   : > { %p47_p0 = scmp.ge.s32.totalorder %s45_s27, 2  ;;  %p494_p1 = scmp.ne.s32.totalorder %s2410_s23, %s2406_s22 }
  0x15   : > { %p495_p2 = scmp.eq.s32.totalorder %s1786_s3, 1  ;;  %p500_p3 = scmp.ne.s32.totalorder %s2406_s22, %s2402_s1 }
  0x16   : > { %s3049_s27 = smov (%p47_p0, %s45_s27), 0  ;;  %p501_p5 = scmp.eq.s32.totalorder %s1787_s26, 1 }
  0x17   : > { %3026 = sst [smem:[#allocation12_spill]] %s3049_s27  ;;  %p2574_p4 = por %p495_p2, %p494_p1 }
  0x18   : > { %s481_s29 = ssub.s32 %s2418_s2, %s3049_s27  ;;  %p1790_p6 = scmp.ge.s32.totalorder %s2422_s25, 1 }
  0x19   : > { %p482_p7 = scmp.eq.s32.totalorder %s481_s29, 0  ;;  %p2581_p8 = por %p501_p5, %p500_p3 }
  0x1a   : > { %p589_p9 = scmp.lt.s32.totalorder %s2422_s25, 3 }
  0x1b   : > { %s2587_s0 = scalar_select %p482_p7, %s2410_s23, %s484_s28  }
  0x1c   : > { %p590_p10 = pnand %p1790_p6, %p589_p9 }
  0x1d   : > { %s3029_s1 = sld [smem:[#allocation15_spill]] (!%p590_p10)  ;;  %v2424_v3 = vmov (!%p590_p10), 0.0|0.0   ;;  %vm2425_vm0 = vmmov (!%p590_p10), 0   ;;  %v2426_v6 = vmov (!%p590_p10), 0.0   ;;  %p651_p11 = scmp.lt.s32.totalorder (!%p590_p10), %s2414_s24, 1  ;;  %vm671_vm1 = vcmask (!%p590_p10), 261120  }
  0x1e   : > { %593 = sbr.rel (%p590_p10) target bundleno = 2008 (0x7d8), region = 100  ;;  %2133 = vmatprep.subr.bf16.mxu1 (!%p590_p10), %v2424_v3  ;;  %1921 = vmatprep.mubr.msk.f32.mxu1 (!%p590_p10), %vm2425_vm0, %v2426_v6  ;;  %944 = vst [vmem:[#allocation5] sm:$0x1] (!%p590_p10), %v2426_v6  ;;  %s3031_s27 = sld [smem:[#allocation14_spill]] (!%p590_p10)  ;;  %v750_v15 = vlaneseq (!%p590_p10)  ;;  %v2427_v39 = vmov (!%p590_p10), -inf   ;;  %v1144_v50 = vld [vmem:[%s2995_s11] sm:$0xff] (!%p590_p10) }
  0x1f   : > { %2147 = vmatprep.subr.bf16.mxu0 (!%p590_p10), %v2424_v3  ;;  %1946 = vmatprep.mubr.msk.f32.mxu0 (!%p590_p10), %vm2425_vm0, %v2426_v6  ;;  %s3032_s10 = sld [smem:[#allocation21_spill]] (!%p590_p10)  ;;  %s3033_s29 = sld [smem:[#allocation16_spill]] (!%p590_p10)  ;;  %943 = vst [vmem:[#allocation4] sm:$0x1] (!%p590_p10), %v2427_v39  ;;  %v1145_v51 = vld [vmem:[%s2995_s11 + $0x8] sm:$0xff] (!%p590_p10)  ;;  %v1146_v53 = vld [vmem:[%s2995_s11 + $0x10] sm:$0xff] (!%p590_p10) }
  0x20   : > { %v2636_v16 = vshrl.u32 (!%p590_p10), %v750_v15, 7  ;;  %s3034_s5 = sld [smem:[#allocation18_spill]] (!%p590_p10)  ;;  %s3036_s6 = sld [smem:[#allocation19_spill]] (!%p590_p10)  ;;  %v2700_v52 = vpack.c.bf16 (!%p590_p10), %v1145_v51, %v1144_v50  ;;  %v1147_v54 = vld [vmem:[%s2995_s11 + $0x18] sm:$0xff] (!%p590_p10)  ;;  %v1148_v56 = vld [vmem:[%s2995_s11 + $0x20] sm:$0xff] (!%p590_p10)  ;;  %v1149_v57 = vld [vmem:[%s2995_s11 + $0x28] sm:$0xff] (!%p590_p10) }
  0x21   : > { %s3037_s28 = sld [smem:[#allocation13_spill]] (!%p590_p10)  ;;  %v2712_v55 = vpack.c.bf16 (!%p590_p10), %v1147_v54, %v1146_v53  ;;  %v2724_v58 = vpack.c.bf16 (!%p590_p10), %v1149_v57, %v1148_v56  ;;  %v1150_v59 = vld [vmem:[%s2995_s11 + $0x30] sm:$0xff] (!%p590_p10)  ;;  %v1151_v60 = vld [vmem:[%s2995_s11 + $0x38] sm:$0xff] (!%p590_p10)  ;;  %v1152_v62 = vld [vmem:[%s2995_s11 + $0x40] sm:$0xff] (!%p590_p10)  ;;  %vm945_vm2 = vcmask (!%p590_p10), 253952   ;;  %s3038_s7 = sld [smem:[#allocation20_spill]] (!%p590_p10) }
  0x22   : > { %v752_v20 = vsub.s32 (!%p590_p10), 0, %v2636_v16  ;;  %v2736_v61 = vpack.c.bf16 (!%p590_p10), %v1151_v60, %v1150_v59  ;;  %v1153_v63 = vld [vmem:[%s2995_s11 + $0x48] sm:$0xff] (!%p590_p10)  ;;  %946 = vst.msk [vmem:[#allocation6] sm:$0x1] (!%p590_p10), %vm945_vm2, %v2426_v6  ;;  %s3040_s26 = sld [smem:[#allocation23_spill]] (!%p590_p10) }
  0x23   : > { %s3030_s20 = smov (!%p590_p10), %s3029_s1  ;;  %v666_v0 = vld [vmem:[%s3029_s1] sm:$0xff] (!%p590_p10) }
  0x24   : > { %v667_v1 = vld [vmem:[%s3030_s20 + $0x8] sm:$0xff] (!%p590_p10)  ;;  %v668_v2 = vld [vmem:[%s3030_s20 + $0x10] sm:$0xff] (!%p590_p10)  ;;  %v669_v5 = vld [vmem:[%s3030_s20 + $0x18] sm:$0xff] (!%p590_p10) }
  0x25   : > { %v2134_v4 = vpack.c.bf16 %v667_v1, %v666_v0  ;;  %v2137_v7 = vpack.c.bf16 %v669_v5, %v668_v2  ;;  %s2610_s18 = scalar_select %p651_p11, %s2414_s24, 1  ;;  %v865_v9 = vld [vmem:[%s3032_s10] sm:$0xff]  ;;  %v866_v10 = vld [vmem:[%s3032_s10 + $0x8] sm:$0xff]  ;;  %v867_v12 = vld [vmem:[%s3032_s10 + $0x10] sm:$0xff]  ;;  %v2748_v0 = vpack.c.bf16 %v1153_v63, %v1152_v62 }
  0x26   : > { %v2148_v11 = vpack.c.bf16 %v866_v10, %v865_v9  ;;  %v868_v13 = vld [vmem:[%s3032_s10 + $0x18] sm:$0xff]  ;;  %v670_v17 = vld [vmem:[%s3033_s29] sm:$0x1]  ;;  %v949_v35 = vld [vmem:[%s3036_s6 + $0x8] sm:$0xff]  ;;  %s1804_s10 = sshll.u32 %s2414_s24, 4  ;;  %s2428_s24 = smov [#allocation7]  }
  0x27   : > { %2135 = vmatpush3.bf16.msra.mxu1 %v2134_v4  ;;  %s2617_s21 = scalar_lea.vmem %s3031_s27, %s2610_s18  ;;  %v2151_v14 = vpack.c.bf16 %v868_v13, %v867_v12  ;;  %v863_v22 = vld [vmem:[%s3034_s5] sm:$0x1]  ;;  %s3035_s27 = sld [smem:[#allocation17_spill]]  ;;  %v950_v36 = vld [vmem:[%s3036_s6 + $0x10] sm:$0xff]  ;;  %v951_v38 = vld [vmem:[%s3036_s6 + $0x18] sm:$0xff] }
  0x28   : > { %2136 = vmatprep.subr.bf16.mxu1 %v2424_v3  ;;  %v665_v8 = vld [vmem:[%s2617_s21] sm:$0x1]  ;;  %2149 = vmatpush3.bf16.msra.mxu0 %v2148_v11  ;;  %s1791_s2 = sshll.u32 %s2610_s18, 3  ;;  %v2157_v40 = vpack.c.bf16 %v951_v38, %v950_v36  ;;  %v1154_v1 = vld [vmem:[%s2995_s11 + $0x50] sm:$0xff]  ;;  %v1155_v2 = vld [vmem:[%s2995_s11 + $0x58] sm:$0xff]  ;;  %s3039_s18 = sld [smem:[#allocation22_spill]] }
  0x29   : > { %2150 = vmatprep.subr.bf16.mxu0 %v2424_v3  ;;  %v948_v34 = vld [vmem:[%s3036_s6] sm:$0xff]  ;;  %s657_s19 = scalar_lea.vmem %s3037_s28, %s1791_s2  ;;  %v2760_v4 = vpack.c.bf16 %v1155_v2, %v1154_v1  ;;  %v1158_v9 = vld [vmem:[%s2995_s11 + $0x70] sm:$0xff]  ;;  %v1159_v10 = vld [vmem:[%s2995_s11 + $0x78] sm:$0xff]  ;;  %s3041_s6 = sld [smem:[#allocation24_spill]] }
  0x2a   : > { %v2154_v37 = vpack.c.bf16 %v949_v35, %v948_v34  ;;  %v947_v41 = vld [vmem:[%s657_s19] sm:$0xff] }
  0x2b   : > { %2138 = vmatpush3.bf16.msra.mxu1 %v2137_v7  ;;  %v1156_v5 = vld [vmem:[%s2995_s11 + $0x60] sm:$0xff]  ;;  %v1157_v7 = vld [vmem:[%s2995_s11 + $0x68] sm:$0xff] }
  0x2c   : > { %2140 = vmatprep.subr.bf16.mxu1 %v2148_v11  ;;  %2152 = vmatpush3.bf16.msra.mxu0 %v2151_v14 }
  0x2d   : > { %2159 = vmatprep.subr.bf16.mxu0 %v2424_v3  ;;  %v747_v24 = vld [vmem:[%s3035_s27 + $0x8] sm:$0xff]  ;;  %v746_v25 = vld [vmem:[%s3035_s27] sm:$0xff]  ;;  %v748_v28 = vld [vmem:[%s3035_s27 + $0x10] sm:$0xff] }
  0x2e   : > { %1922 = vmatmul.mubr.msk.f32.vlgmr.msra.gmra.mrb[0].mxu1 %vm671_vm1, %v665_v8  ;;  %v749_v32 = vld [vmem:[%s3035_s27 + $0x18] sm:$0xff]  ;;  %v2772_v8 = vpack.c.bf16 %v1157_v7, %v1156_v5 }
  0x2f   : > { %2142 = vmatpush3.bf16.msra.mxu1 %v2148_v11  ;;  %v2187_v11 = vpack.c.bf16 %v1159_v10, %v1158_v9  ;;  %v1411_v9 = vld [vmem:[%s2993_s9] sm:$0x1] }
  0x30   : > { %2144 = vmatprep.subr.bf16.mxu1 %v2151_v14 }
  0x33   : > { %2146 = vmatpush3.bf16.msra.mxu1 %v2151_v14 }
  0x34   : > { %2153 = vmatprep.subr.bf16.mxu1 %v2424_v3 }
 0x101   : > { %v741_v18 = vpop.f32.mrb[0].mxu1 }
 0x102   : > { %v742_v19 = vadd.f32 %v741_v18, %v670_v17  ;;  %v1923_v21 = vpop.f32.mrb[1].mxu1 }
 0x104   : > { %v745_v23 = vmul.f32 0.35355338, %v742_v19 }
 0x106   : > { %v753_v26 = vrot.slane %v745_v23, %v752_v20  ;;  %v864_v27 = vmul.f32 %v863_v22, %v745_v23 }
 0x108   : > { %v755_v29 = vmul.f32 %v753_v26, %v747_v24  ;;  %1947 = vmatmul.mubr.msk.f32.vlgmr.msra.gmra.mrb[0].mxu0 %vm671_vm1, %v864_v27  ;;  %v754_v30 = vmul.f32 %v753_v26, %v746_v25  ;;  %v756_v31 = vmul.f32 %v753_v26, %v748_v28  ;;  %v757_v33 = vmul.f32 %v753_v26, %v749_v32  ;;  %v1114_v25 = vld [vmem:[#allocation4] sm:$0x1] }
 0x109   : > { %1968 = vmatprep.mubr.msk.f32.mxu0 %vm2425_vm0, %v2426_v6 }
 0x10a   : > { %1932 = vmatprep.mubr.msk.f32.mxu1 %vm671_vm1, %v754_v30 }
 0x10b   : > { %1933 = vmatmul.mubr.msk.f32.vlgmr.msra.gmra.mrb[2].mxu1 %vm671_vm1, %v755_v29 }
 0x10c   : > { %1935 = vmatprep.mubr.msk.f32.mxu1 %vm671_vm1, %v756_v31  ;;  %2155 = vmatpush3.bf16.msra.mxu1 %v2154_v37  ;;  %v1134_v37 = vld [vmem:[#allocation5] sm:$0x1] }
 0x10d   : > { %2156 = vmatprep.subr.bf16.mxu1 %v2424_v3 }
 0x10f   : > { %1936 = vmatmul.mubr.msk.f32.gmra.mrb[4].mxu1 %vm671_vm1, %v757_v33 }
 0x110   : > { %1957 = vmatprep.mubr.msk.f32.mxu1 %vm2425_vm0, %v2426_v6  ;;  %2158 = vmatpush3.bf16.msra.mxu1 %v2157_v40 }
 0x111   : > { %2165 = vmatprep.subr.bf16.mxu1 %v2424_v3 }
 0x113   : > { %1958 = vmatmul.mubr.msk.f32.vlgmr.msra.gmra.mrb[6].mxu1 %vm671_vm1, %v947_v41 }
 0x114   : > { %2003 = vmatprep.mubr.msk.f32.mxu1 %vm2425_vm0, %v2426_v6  ;;  %2167 = vmatpush3.bf16.msra.mxu1 %v2700_v52 }
 0x115   : > { %2168 = vmatprep.subr.bf16.mxu1 %v2424_v3 }
 0x118   : > { %2170 = vmatpush3.bf16.msra.mxu1 %v2712_v55 }
 0x119   : > { %2171 = vmatprep.subr.bf16.mxu1 %v2424_v3 }
 0x11c   : > { %2173 = vmatpush3.bf16.msra.mxu1 %v2724_v58 }
 0x11d   : > { %2174 = vmatprep.subr.bf16.mxu1 %v2424_v3 }
 0x120   : > { %2176 = vmatpush3.bf16.msra.mxu1 %v2736_v61 }
 0x121   : > { %2177 = vmatprep.subr.bf16.mxu1 %v2424_v3 }
 0x124   : > { %2179 = vmatpush3.bf16.msra.mxu1 %v2748_v0 }
 0x125   : > { %2180 = vmatprep.subr.bf16.mxu1 %v2424_v3 }
 0x128   : > { %2182 = vmatpush3.bf16.msra.mxu1 %v2760_v4 }
 0x129   : > { %2183 = vmatprep.subr.bf16.mxu1 %v2424_v3 }
 0x12c   : > { %2185 = vmatpush3.bf16.msra.mxu1 %v2772_v8 }
 0x12d   : > { %2186 = vmatprep.subr.bf16.mxu1 %v2424_v3 }
 0x130   : > { %2188 = vmatpush3.bf16.msra.mxu1 %v2187_v11 }
 0x131   : > { %2213 = vmatprep.subr.bf16.mxu1 %v2424_v3 }
 0x1db   : > { %v938_v42 = vpop.f32.mrb[0].mxu0 }
 0x1dc   : > { %942 = vst [vmem:[#allocation3] sm:$0x1] %v938_v42  ;;  %v1948_v43 = vpop.f32.mrb[1].mxu0 }
 0x1dd   : > { %v1407_v43 = vld [vmem:[%s2992_s8] sm:$0xff] }
 0x1de   : > { %v1934_v44 = vpop.f32.mrb[2].mxu1 }
 0x1df   : > { %v840_v45 = vpop.f32.mrb[3].mxu1 }
 0x1e0   : > { %v2160_v46 = vpack.c.bf16 %v1934_v44, %v840_v45  ;;  %v1408_v44 = vld [vmem:[%s2992_s8 + $0x8] sm:$0xff] }
 0x1e1   : > { %v2238_v45 = vpack.c.bf16 %v1408_v44, %v1407_v43  ;;  %v1594_v44 = vld [vmem:[%s3000_s16 + $0x20] sm:$0xff] }
 0x1e2   : > { %v1937_v47 = vpop.f32.mrb[4].mxu1  ;;  %2161 = vmatpush3.bf16.msra.mxu0 %v2160_v46  ;;  %v1409_v46 = vld [vmem:[%s2992_s8 + $0x10] sm:$0xff] }
 0x1e3   : > { %v850_v48 = vpop.f32.mrb[5].mxu1  ;;  %2162 = vmatprep.subr.bf16.mxu0 %v2424_v3  ;;  %v1800_v14 = vld [vmem:[#allocation3] ss:$0 sm:$0xff] }
 0x1e4   : > { %v2163_v49 = vpack.c.bf16 %v1937_v47, %v850_v48  ;;  %v1410_v47 = vld [vmem:[%s2992_s8 + $0x18] sm:$0xff] }
 0x1e5   : > { %v2241_v48 = vpack.c.bf16 %v1410_v47, %v1409_v46  ;;  %v1597_v47 = vld [vmem:[%s3000_s16 + $0x38] sm:$0xff] }
 0x1e6   : > { %2164 = vmatpush3.bf16.msra.mxu0 %v2163_v49  ;;  %v2786_v12 = vpop.f32.mrb[6].mxu1  ;;  %v1798_v49 = vld [vmem:[%s3038_s7] ss:$0 sm:$0xff]  ;;  %s2936_s7 = scalar_lea.hbm %s3041_s6, %s1804_s10 }
 0x1e7   : > { %2189 = vmatprep.subr.bf16.mxu0 %v2424_v3  ;;  %v1959_v13 = vpop.f32.mrb[7].mxu1  ;;  %v1030_v51 = vadd.f32 %v1798_v49, %v2786_v12  ;;  %v1598_v49 = vld [vmem:[%s3000_s16 + $0x40] sm:$0xff] }
 0x1e9   : > { %1969 = vmatmul.mubr.msk.f32.vlgmr.msra.gmra.mrb[2].mxu0 %vm671_vm1, %v947_v41 }
 0x1ea   : > { %2038 = vmatprep.mubr.msk.f32.mxu0 %vm2425_vm0, %v2426_v6  ;;  %2191 = vmatpush3.bf16.msra.mxu0 %v2700_v52 }
 0x1eb   : > { %2192 = vmatprep.subr.bf16.mxu0 %v2424_v3 }
 0x1ee   : > { %2194 = vmatpush3.bf16.msra.mxu0 %v2712_v55 }
 0x1ef   : > { %2195 = vmatprep.subr.bf16.mxu0 %v2424_v3 }
 0x1f2   : > { %2197 = vmatpush3.bf16.msra.mxu0 %v2724_v58 }
 0x1f3   : > { %2198 = vmatprep.subr.bf16.mxu0 %v2424_v3 }
 0x1f6   : > { %2200 = vmatpush3.bf16.msra.mxu0 %v2736_v61 }
 0x1f7   : > { %2201 = vmatprep.subr.bf16.mxu0 %v2424_v3 }
 0x1fa   : > { %2203 = vmatpush3.bf16.msra.mxu0 %v2748_v0 }
 0x1fb   : > { %2204 = vmatprep.subr.bf16.mxu0 %v2424_v3 }
 0x1fe   : > { %2206 = vmatpush3.bf16.msra.mxu0 %v2760_v4 }
 0x1ff   : > { %2207 = vmatprep.subr.bf16.mxu0 %v2424_v3 }
 0x202   : > { %2209 = vmatpush3.bf16.msra.mxu0 %v2772_v8 }
 0x203   : > { %2210 = vmatprep.subr.bf16.mxu0 %v2424_v3 }
 0x206   : > { %2212 = vmatpush3.bf16.msra.mxu0 %v2187_v11 }
 0x207   : > { %2237 = vmatprep.subr.bf16.mxu0 %v2424_v3 }
 0x2bc   : > { %v1110_v15 = vpop.f32.mrb[2].mxu0 }
 0x2bd   : > { %v1111_v17 = vadd.f32 %v1800_v14, %v1110_v15  ;;  %v1970_v18 = vpop.f32.mrb[3].mxu0 }
 0x2bf   : > { %v1115_v19 = vrot.slane %v1111_v17, 4 }
 0x2c1   : > { %v1116_v21 = vmax.f32 %v1111_v17, %v1115_v19  ;;  %v1507_v19 = vld [vmem:[%s2998_s14] sm:$0xff] }
 0x2c3   : > { %v1117_v22 = vrot.slane %v1116_v21, 2 }
 0x2c5   : > { %v1118_v23 = vmax.f32 %v1116_v21, %v1117_v22  ;;  %v1508_v21 = vld [vmem:[%s2998_s14 + $0x8] sm:$0xff] }
 0x2c6   : > { %v2244_v22 = vpack.c.bf16 %v1508_v21, %v1507_v19 }
 0x2c7   : > { %v1119_v24 = vrot.slane %v1118_v23, 1 }
 0x2c9   : > { %v1120_v26 = vmax.f32 %v1118_v23, %v1119_v24  ;;  %v1509_v23 = vld [vmem:[%s2998_s14 + $0x10] sm:$0xff]  ;;  %v1510_v24 = vld [vmem:[%s2998_s14 + $0x18] sm:$0xff] }
 0x2cb   : > { %v1121_v27 = vmax.f32 %v1114_v25, %v1120_v26 }
 0x2cd   : > { %v1122_v28 = vsub.f32 %v1114_v25, %v1121_v27  ;;  %v1129_v29 = vrot.slane %v1121_v27, %v752_v20  ;;  %1313 = vst [vmem:[#allocation4] sm:$0x1] %v1121_v27  ;;  %v2247_v25 = vpack.c.bf16 %v1510_v24, %v1509_v23 }
 0x2cf   : > { %v1123_v30 = vmul.f32 1.442695, %v1122_v28  ;;  %v1131_v31 = vsub.f32 %v1111_v17, %v1129_v29 }
 0x2d1   : > { %2332 = vpow2.f32 %v1123_v30  ;;  %v1132_v32 = vmul.f32 1.442695, %v1131_v31 }
 0x2d3   : > { %2334 = vpow2.f32 %v1132_v32 }
 0x2db   : > { %v2333_v33 = vpop.eup %2332 }
 0x2dc   : > { %2039 = vmatmul.mubr.f32.vlgmr.msra.gmra.mrb[4].mxu0 %v2333_v33  ;;  %v1135_v39 = vmul.f32 %v2333_v33, %v1134_v37  ;;  %v1488_v37 = vld [vmem:[%s2997_s13] sm:$0x1] }
 0x2dd   : > { %v2335_v34 = vpop.eup %2334  ;;  %2084 = vmatprep.mubr.msk.f32.mxu0 %vm2425_vm0, %v2426_v6  ;;  %2239 = vmatpush3.bf16.msra.mxu0 %v2238_v45  ;;  %v1595_v45 = vld [vmem:[%s3000_s16 + $0x28] sm:$0xff] }
 0x2de   : > { %v1136_v35 = vrot.slane %v2335_v34, 4  ;;  %2004 = vmatmul.mubr.f32.vlgmr.msra.gmra.mrb[8].mxu1 %v2335_v34  ;;  %2240 = vmatprep.subr.bf16.mxu0 %v2424_v3  ;;  %v2256_v46 = vpack.c.bf16 %v1595_v45, %v1594_v44 }
 0x2df   : > { %2215 = vmatpush3.bf16.msra.mxu1 %v2700_v52  ;;  %2073 = vmatprep.mubr.msk.f32.mxu1 %vm2425_vm0, %v2426_v6 }
 0x2e0   : > { %v1137_v16 = vadd.f32 %v2335_v34, %v1136_v35  ;;  %2216 = vmatprep.subr.bf16.mxu1 %v2424_v3  ;;  %v1487_v35 = vld [vmem:[%s2996_s12] sm:$0x1] }
 0x2e1   : > { %2242 = vmatpush3.bf16.msra.mxu0 %v2241_v48 }
 0x2e2   : > { %v1138_v20 = vrot.slane %v1137_v16, 2  ;;  %2243 = vmatprep.subr.bf16.mxu0 %v2424_v3 }
 0x2e3   : > { %2218 = vmatpush3.bf16.msra.mxu1 %v2712_v55 }
 0x2e4   : > { %v1139_v36 = vadd.f32 %v1138_v20, %v1137_v16  ;;  %2219 = vmatprep.subr.bf16.mxu1 %v2424_v3  ;;  %v1590_v20 = vld [vmem:[%s3000_s16] sm:$0xff] }
 0x2e6   : > { %v1140_v38 = vrot.slane %v1139_v36, 1 }
 0x2e7   : > { %2221 = vmatpush3.bf16.msra.mxu1 %v2724_v58 }
 0x2e8   : > { %v1141_v40 = vadd.f32 %v1140_v38, %v1139_v36  ;;  %2222 = vmatprep.subr.bf16.mxu1 %v2424_v3  ;;  %v1591_v36 = vld [vmem:[%s3000_s16 + $0x8] sm:$0xff] }
 0x2ea   : > { %v1142_v41 = vadd.f32 %v1141_v40, %v1135_v39  ;;  %v2250_v39 = vpack.c.bf16 %v1591_v36, %v1590_v20 }
 0x2eb   : > { %2224 = vmatpush3.bf16.msra.mxu1 %v2736_v61  ;;  %v1300_v61 = vld [vmem:[#allocation6] sm:$0x1] }
 0x2ec   : > { %1143 = vst [vmem:[#allocation5] sm:$0x1] %v1142_v41  ;;  %2225 = vmatprep.subr.bf16.mxu1 %v2424_v3  ;;  %v1592_v41 = vld [vmem:[%s3000_s16 + $0x10] sm:$0xff] }
 0x2ef   : > { %2227 = vmatpush3.bf16.msra.mxu1 %v2748_v0 }
 0x2f0   : > { %2228 = vmatprep.subr.bf16.mxu1 %v2424_v3 }
 0x2f3   : > { %2230 = vmatpush3.bf16.msra.mxu1 %v2760_v4  ;;  %v1317_v42 = vld [vmem:[#allocation5] sm:$0x1] }
 0x2f4   : > { %2231 = vmatprep.subr.bf16.mxu1 %v2424_v3 }
 0x2f7   : > { %2233 = vmatpush3.bf16.msra.mxu1 %v2772_v8 }
 0x2f8   : > { %2234 = vmatprep.subr.bf16.mxu1 %v2424_v3 }
 0x2fb   : > { %2236 = vmatpush3.bf16.msra.mxu1 %v2187_v11  ;;  %v1485_v11 = vld [vmem:[%s2617_s21] sm:$0x1]  ;;  %s649_s21 = sand.u32 1, %s2406_s22  }
 0x2fc   : > { %s650_s2 = scalar_lea.vmem [#allocation7], %s649_s21  ;;  %s1699_s28 = scalar_lea.sflag [#allocation8], %s649_s21 }
 0x2fd   : > { %s1711_s29 = sshll.u32 %s650_s2, 4  ;;  %s2938_s29 = int_to_ptr.vmem [resolvable:$true] %s1711_s29 }
 0x2fe   : > { %2074 = vmatmul.mubr.f32.vlgmr.msra.gmra.mrb[10].mxu1 %v1317_v42  ;;  %v1593_v42 = vld [vmem:[%s3000_s16 + $0x18] sm:$0xff]  ;;  %s2344_s19 = scalar_lea.vmem %s2938_s29, 16 }
 0x2ff   : > { %v2253_v43 = vpack.c.bf16 %v1593_v42, %v1592_v41  ;;  %p2345_p12 = scmp.ne.s32.totalorder %s2938_s29, %s2344_s19 }
 0x301   : > { %p2346_p13 = pnand %p2345_p12, %p2574_p4 }
 0x303   : > { %p2347_p0 = pneg %p2346_p13 }
 0x3af   : > { %v1296_v50 = vpop.f32.mrb[4].mxu0 }
 0x3b0   : > { %v2040_v52 = vpop.f32.mrb[5].mxu0  ;;  %v1301_v63 = vmul.f32 %v1300_v61, %v1296_v50  ;;  %v1599_v50 = vld [vmem:[%s3000_s16 + $0x48] sm:$0xff]  ;;  %v1511_v61 = vld [vmem:[%s2999_s15] sm:$0x1] }
 0x3b1   : > { %v1226_v53 = vpop.f32.mrb[8].mxu1  ;;  %v1600_v52 = vld [vmem:[%s3000_s16 + $0x50] sm:$0xff] }
 0x3b2   : > { %v1302_v54 = vmul.f32 %v1226_v53, %v1030_v51  ;;  %v2005_v55 = vpop.f32.mrb[9].mxu1  ;;  %v2262_v51 = vpack.c.bf16 %v1599_v50, %v1598_v49  ;;  %v1601_v53 = vld [vmem:[%s3000_s16 + $0x58] sm:$0xff] }
 0x3b3   : > { %v1602_v55 = vld [vmem:[%s3000_s16 + $0x60] sm:$0xff] }
 0x3b4   : > { %v1303_v56 = vsel %vm671_vm1, %v1302_v54, 0.0  ;;  %v2265_v54 = vpack.c.bf16 %v1601_v53, %v1600_v52 }
 0x3b5   : > { %v1304_v57 = vrot.slane %v1303_v56, 4 }
 0x3b7   : > { %v1305_v58 = vadd.f32 %v1304_v57, %v1303_v56  ;;  %v1603_v56 = vld [vmem:[%s3000_s16 + $0x68] sm:$0xff] }
 0x3b8   : > { %v2268_v57 = vpack.c.bf16 %v1603_v56, %v1602_v55 }
 0x3b9   : > { %v1306_v59 = vrot.slane %v1305_v58, 2 }
 0x3bb   : > { %v1307_v60 = vadd.f32 %v1306_v59, %v1305_v58  ;;  %v1604_v58 = vld [vmem:[%s3000_s16 + $0x70] sm:$0xff]  ;;  %v1605_v59 = vld [vmem:[%s3000_s16 + $0x78] sm:$0xff] }
 0x3bd   : > { %v1308_v62 = vrot.slane %v1307_v60, 1 }
 0x3bf   : > { %v1309_v0 = vadd.f32 %v1308_v62, %v1307_v60  ;;  %v2271_v60 = vpack.c.bf16 %v1605_v59, %v1604_v58 }
 0x3c1   : > { %v1310_v1 = vadd.f32 %v1309_v0, %v1301_v63 }
 0x3c3   : > { %1312 = vst.msk [vmem:[#allocation6] sm:$0x1] %vm945_vm2, %v1310_v1 }
 0x3ca   : > { %v1404_v7 = vld [vmem:[#allocation6] sm:$0x1] }
 0x3d1   : > { %v1400_v2 = vpop.f32.mrb[10].mxu1 }
 0x3d2   : > { %2336 = vrcp.f32 %v1400_v2  ;;  %v2075_v4 = vpop.f32.mrb[11].mxu1 }
 0x3dc   : > { %v2337_v5 = vpop.eup %2336 }
 0x3dd   : > { %v1406_v8 = vmul.f32 %v2337_v5, %v1404_v7  ;;  %v1606_v7 = vld [vmem:[%s3001_s17] sm:$0x1] }
 0x3df   : > { %2085 = vmatmul.mubr.msk.f32.vlgmr.msra.gmra.mrb[6].mxu0 %vm671_vm1, %v1406_v8 }
 0x3e0   : > { %2095 = vmatprep.mubr.msk.f32.mxu0 %vm2425_vm0, %v2426_v6  ;;  %2245 = vmatpush3.bf16.msra.mxu0 %v2244_v22 }
 0x3e1   : > { %2246 = vmatprep.subr.bf16.mxu0 %v2424_v3 }
 0x3e4   : > { %2248 = vmatpush3.bf16.msra.mxu0 %v2247_v25 }
 0x3e5   : > { %2249 = vmatprep.subr.bf16.mxu0 %v2424_v3 }
 0x4b2   : > { %v1481_v10 = vpop.f32.mrb[6].mxu0 }
 0x4b3   : > { %v1482_v12 = vadd.f32 %v1481_v10, %v1411_v9  ;;  %v2086_v13 = vpop.f32.mrb[7].mxu0 }
 0x4b5   : > { %v1486_v14 = vadd.f32 %v1485_v11, %v1482_v12 }
 0x4b7   : > { %v1489_v15 = vsel %vm945_vm2, %v1486_v14, 0.0  ;;  %v1494_v17 = vmul.f32 %v1486_v14, %v1486_v14 }
 0x4b8   : > { %1490 = vadd.xlane.f32.xlu0 %v1489_v15 }
 0x4b9   : > { %v1495_v18 = vsel %vm945_vm2, %v1494_v17, 0.0 }
 0x4bc   : > { %1496 = vadd.xlane.f32.xlu0 %v1495_v18 }
 0x545   : > { %v1491_v26 = vpop.xlane.xlu0 %1490 }
 0x546   : > { %v1493_v27 = vmul.f32 0.03125, %v1491_v26  ;;  %v1678_v26 = vld [vmem:[%s3039_s18] sm:$0x1]  ;;  %s2348_s18 = sshll.u32 %s2428_s24, 4  ;;  %s2349_s18 = int_to_ptr.vmem [resolvable:$false] %s2348_s18 }
 0x547   : > { %s2350_s1 = scalar_lea.vmem %s2349_s18, 32  ;;  %p2351_p1 = scmp.lt.s32.totalorder %s2938_s29, %s2349_s18 }
 0x548   : > { %v1499_v29 = vmul.f32 %v1493_v27, %v1493_v27  ;;  %v1501_v33 = vsub.f32 %v1486_v14, %v1493_v27  ;;  %p2352_p2 = scmp.lt.s32.totalorder %s2350_s1, %s2344_s19 }
 0x549   : > { %v1497_v28 = vpop.xlane.xlu0 %1496 }
 0x54a   : > { %v1498_v30 = vmul.f32 0.03125, %v1497_v28  ;;  %v1679_v28 = vld [vmem:[%s3040_s26] sm:$0x1]  ;;  %p2353_p3 = por %p2352_p2, %p2351_p1 }
 0x54c   : > { %v1500_v31 = vsub.f32 %v1498_v30, %v1499_v29  ;;  %p2354_p5 = pnand %p2353_p3, %p2347_p0 }
 0x54e   : > { %v1502_v32 = vadd.f32 1e-05, %v1500_v31 }
 0x550   : > { %2338 = vrsqrt.f32 %v1502_v32 }
 0x55a   : > { %v2339_v34 = vpop.eup %2338 }
 0x55b   : > { %v1504_v16 = vmul.f32 %v2339_v34, %v1501_v33 }
 0x55d   : > { %v1505_v38 = vmul.f32 %v1504_v16, %v1487_v35 }
 0x55f   : > { %v1506_v40 = vadd.f32 %v1505_v38, %v1488_v37 }
 0x561   : > { %2096 = vmatmul.mubr.msk.f32.vlgmr.msra.gmra.mrb[8].mxu0 %vm671_vm1, %v1506_v40 }
 0x562   : > { %2251 = vmatpush3.bf16.msra.mxu0 %v2250_v39  ;;  %2130 = vmatprep.mubr.msk.f32.mxu0 %vm2425_vm0, %v2426_v6  ;;  %v1596_v6 = vld [vmem:[%s3000_s16 + $0x30] sm:$0xff] }
 0x563   : > { %2252 = vmatprep.subr.bf16.mxu0 %v2424_v3  ;;  %v2259_v48 = vpack.c.bf16 %v1597_v47, %v1596_v6 }
 0x566   : > { %2254 = vmatpush3.bf16.msra.mxu0 %v2253_v43 }
 0x567   : > { %2255 = vmatprep.subr.bf16.mxu0 %v2424_v3 }
 0x56a   : > { %2257 = vmatpush3.bf16.msra.mxu0 %v2256_v46 }
 0x56b   : > { %2258 = vmatprep.subr.bf16.mxu0 %v2424_v3 }
 0x56e   : > { %2260 = vmatpush3.bf16.msra.mxu0 %v2259_v48 }
 0x56f   : > { %2261 = vmatprep.subr.bf16.mxu0 %v2424_v3 }
 0x572   : > { %2263 = vmatpush3.bf16.msra.mxu0 %v2262_v51 }
 0x573   : > { %2264 = vmatprep.subr.bf16.mxu0 %v2424_v3 }
 0x576   : > { %2266 = vmatpush3.bf16.msra.mxu0 %v2265_v54 }
 0x577   : > { %2267 = vmatprep.subr.bf16.mxu0 %v2424_v3 }
 0x57a   : > { %2269 = vmatpush3.bf16.msra.mxu0 %v2268_v57 }
 0x57b   : > { %2270 = vmatprep.subr.bf16.mxu0 %v2424_v3 }
 0x57e   : > { %2272 = vmatpush3.bf16.msra.mxu0 %v2271_v60 }
 0x634   : > { %v1581_v62 = vpop.f32.mrb[8].mxu0 }
 0x635   : > { %v1582_v63 = vadd.f32 %v1581_v62, %v1511_v61  ;;  %v2097_v0 = vpop.f32.mrb[9].mxu0 }
 0x637   : > { %v1586_v1 = vmul.f32 0.70710677, %v1582_v63  ;;  %v1585_v2 = vmul.f32 0.5, %v1582_v63 }
 0x639   : > { %2340 = verf.f32 %v1586_v1 }
 0x643   : > { %v2341_v3 = vpop.eup %2340 }
 0x644   : > { %v1588_v4 = vadd.f32 1.0, %v2341_v3 }
 0x646   : > { %v1589_v5 = vmul.f32 %v1588_v4, %v1585_v2 }
 0x648   : > { %2131 = vmatmul.mubr.f32.vlgmr.msra.gmra.mrb[10].mxu0 %v1589_v5 }
 0x71b   : > { %v1673_v8 = vpop.f32.mrb[10].mxu0 }
 0x71c   : > { %v1674_v9 = vadd.f32 %v1673_v8, %v1606_v7  ;;  %v2132_v10 = vpop.f32.mrb[11].mxu0 }
 0x71e   : > { %v1677_v11 = vadd.f32 %v1674_v9, %v1506_v40 }
 0x720   : > { %v1680_v12 = vsel %vm945_vm2, %v1677_v11, 0.0  ;;  %v1684_v13 = vmul.f32 %v1677_v11, %v1677_v11 }
 0x721   : > { %1681 = vadd.xlane.f32.xlu1 %v1680_v12 }
 0x722   : > { %v1685_v14 = vsel %vm945_vm2, %v1684_v13, 0.0 }
 0x725   : > { %1686 = vadd.xlane.f32.xlu1 %v1685_v14 }
 0x7ae   : > { %v1682_v15 = vpop.xlane.xlu1 %1681 }
 0x7af   : > { %v1683_v17 = vmul.f32 0.03125, %v1682_v15 }
 0x7b1   : > { %v1689_v19 = vmul.f32 %v1683_v17, %v1683_v17  ;;  %v1691_v24 = vsub.f32 %v1677_v11, %v1683_v17 }
 0x7b2   : > { %v1687_v18 = vpop.xlane.xlu1 %1686 }
 0x7b3   : > { %v1688_v21 = vmul.f32 0.03125, %v1687_v18 }
 0x7b5   : > { %v1690_v22 = vsub.f32 %v1688_v21, %v1689_v19 }
 0x7b7   : > { %v1692_v23 = vadd.f32 1e-05, %v1690_v22 }
 0x7b9   : > { %2342 = vrsqrt.f32 %v1692_v23 }
 0x7c3   : > { %v2343_v25 = vpop.eup %2342 }
 0x7c4   : > { %v1694_v27 = vmul.f32 %v2343_v25, %v1691_v24 }
 0x7c6   : > { %v1695_v29 = vmul.f32 %v1694_v27, %v1678_v26 }
 0x7c8   : > { %v1696_v30 = vadd.f32 %v1695_v29, %v1679_v28 }
 0x7ca   : > { %1697 = vst.msk [vmem:[%s650_s2] sm:$0x1] %vm945_vm2, %v1696_v30 }
 0x7cb   : > { %2357 = shalt.err (!%p2354_p5)
}
 0x7cc   : > { %s2358_s5 = scalar_lea.hbm %s2936_s7, 16  ;;  %s2362_s26 = scalar_lea.hbm %s3041_s6, 32 }
 0x7cd   : > { %p2359_p6 = scmp.ne.s32.totalorder %s2936_s7, %s2358_s5  ;;  %p2363_p10 = scmp.lt.u32.totalorder %s2936_s7, %s3041_s6 }
 0x7ce   : > { %p2364_p11 = scmp.lt.u32.totalorder %s2362_s26, %s2358_s5  ;;  %p2366_p13 = scmp.lt.u32.totalorder %s2358_s5, %s2936_s7 }
 0x7cf   : > { %p2360_p7 = pnand %p2359_p6, %p2574_p4 }
 0x7d0   : > { %p2365_p12 = por %p2364_p11, %p2363_p10 }
 0x7d1   : > { %p2361_p9 = pneg %p2360_p7 }
 0x7d2   : > { %p2367_p0 = por %p2366_p13, %p2365_p12 }
 0x7d4   : > { %p2368_p1 = pnand %p2367_p0, %p2361_p9 }
 0x7d6   : > { %2371 = shalt.err (!%p2368_p1)
}
 0x7d7   : > { %2273 = dma.vmem_to_hbm [thread:$0]  (%p2574_p4), %s2938_s29, 16, %s2936_s7, %s1699_s28  }
 0x7d8 PF: > { %s3042_s20 = sld [smem:[#allocation10_spill]]  ;;  %p2279_p2 = scmp.ge.s32.totalorder %s2422_s25, 2 }
 0x7da   : > { %p2276_p3 = pnand %p2279_p2, %p2581_p8 }
 0x7de   : > { %s1723_s19 = sand.u32 1, %s3042_s20  }
 0x7df   : > { %s1724_s24 = scalar_lea.sflag [#allocation8], %s1723_s19 }
 0x7e0   : > { %2397 = dma.done.wait (!%p2276_p3), %s1724_s24, 16  }
 0x7e1   : > { %2399 = vsyncadd (!%p2276_p3), %s1724_s24, 4294967280  ;;  %s33_s25 = sadd.s32 1, %s2422_s25   ;;  %s3043_s24 = sld [smem:[#allocation11_spill]] }
 0x7e2   : > { %p30_p5 = scmp.ge.s32.totalorder %s33_s25, 4   ;;  %s3044_s2 = sld [smem:[#allocation12_spill]] }
 0x7e3   : > { %s3045_s1 = smov %s2406_s22  ;;  %s3046_s22 = smov %s2410_s23 }
 0x7e4   : > { %s3047_s23 = smov %s2587_s0  ;;  %32 = sbr.rel (!%p30_p5) target bundleno = 17 (0x11), region = 146 }
 0x7eb   :  { %1728 = vsyncpa [#allocation8], 1 }
 0x7ec   :  { %1730 = vsyncpa [#allocation8 + $0x1], 1 }

</bundles_post_ra>
